<compile_context>
chip_gen: v5e
topology: v5e:2x2
jax: 0.10.0
libtpu: 0.0.40
codegen_flags: <defaults>
</compile_context>

<pallas_src>
import jax
import jax.numpy as jnp
from jax import lax
from jax.experimental import pallas as pl
from jax.experimental.pallas import tpu as pltpu


# ----------------------------------------------------------------------------
# Pallas kernel: 3x3 conv (stride 1, pad already applied) as 9 tap matmuls
# ----------------------------------------------------------------------------
def _conv3x3_kernel(xp_ref, w_ref, o_ref):
    """xp_ref: (1, H+2, W+2, Cin)  zero-padded full image (block index depends
               only on the batch grid axis, so it stays resident across the
               row-tile axis -- fetched once per image).
       w_ref : (3, 3, Cin, Cout)   conv weights, resident in VMEM.
       o_ref : (1, TH, W, Cout)    one full-width row tile of the conv output.
    """
    t = pl.program_id(1)
    _, TH, W, Cout = o_ref.shape
    Cin = xp_ref.shape[-1]
    row0 = pl.multiple_of(t * TH, TH)

    acc = jnp.zeros((TH * W, Cout), jnp.float32)
    for di in range(3):
        # (TH, W+2, Cin) row strip for this vertical tap offset.
        strip = xp_ref[0, pl.ds(row0 + di, TH), :, :]
        for dj in range(3):
            patch = strip[:, dj:dj + W, :].reshape(TH * W, Cin)
            acc = acc + jnp.dot(patch, w_ref[di, dj],
                                preferred_element_type=jnp.float32)
    o_ref[0] = acc.reshape(TH, W, Cout).astype(o_ref.dtype)


def _pick_row_tile(H, W, max_rows=4096):
    """Largest divisor TH of H with TH*W <= max_rows (bounds the accumulator)."""
    th = 1
    for cand in range(1, H + 1):
        if H % cand == 0 and cand * W <= max_rows:
            th = cand
    return th


# ----------------------------------------------------------------------------
# Downsample forward: conv3x3 (Pallas) + PixelUnshuffle(2) (layout glue)
# ----------------------------------------------------------------------------
def downsample_forward(x, w):
    """x: [B, C, H, W] f32 (NCHW), w: [C//2, C, 3, 3] (OIHW, bias-free).
    Returns [B, 2*C, H//2, W//2] f32 (NCHW), matching the PyTorch module."""
    B, C, H, W = x.shape
    Cout = C // 2
    assert C % 2 == 0 and H % 2 == 0 and W % 2 == 0

    # Single NCHW -> NHWC conversion fused with the 1-pixel zero halo pad.
    xn = jnp.pad(jnp.transpose(x, (0, 2, 3, 1)), ((0, 0), (1, 1), (1, 1), (0, 0)))
    wt = jnp.transpose(w, (2, 3, 1, 0))            # (3, 3, Cin, Cout)

    TH = _pick_row_tile(H, W)
    # TODO(synk): for very large H*W the whole padded image no longer fits VMEM;
    # switch the image input to memory_space=pl.ANY and manually DMA (TH+2)-row
    # halo strips with double buffering instead of the resident full-image block.
    y = pl.pallas_call(
        _conv3x3_kernel,
        out_shape=jax.ShapeDtypeStruct((B, H, W, Cout), x.dtype),
        grid=(B, H // TH),
        in_specs=[
            pl.BlockSpec((1, H + 2, W + 2, C), lambda b, t: (b, 0, 0, 0)),
            pl.BlockSpec((3, 3, C, Cout), lambda b, t: (0, 0, 0, 0)),
        ],
        out_specs=pl.BlockSpec((1, TH, W, Cout), lambda b, t: (b, t, 0, 0)),
        compiler_params=pltpu.CompilerParams(
            dimension_semantics=("parallel", "parallel")),
    )(xn, wt)

    # PixelUnshuffle(2) + back to NCHW: out[b, c*4 + 2*dy + dx, i, j] = y[b, 2i+dy, 2j+dx, c]
    y = y.reshape(B, H // 2, 2, W // 2, 2, Cout)
    return jnp.transpose(y, (0, 5, 2, 4, 1, 3)).reshape(B, 4 * Cout, H // 2, W // 2)


# ----------------------------------------------------------------------------
# Pure-JAX reference (for correctness check only)
# ----------------------------------------------------------------------------
def downsample_ref(x, w):
    y = lax.conv_general_dilated(
        x, w, window_strides=(1, 1), padding=((1, 1), (1, 1)),
        dimension_numbers=("NCHW", "OIHW", "NCHW"),
        precision=lax.Precision.HIGHEST)
    B, Co, H, W = y.shape
    y = y.reshape(B, Co, H // 2, 2, W // 2, 2)
    return jnp.transpose(y, (0, 1, 3, 5, 2, 4)).reshape(B, Co * 4, H // 2, W // 2)


if __name__ == "__main__":
    key = jax.random.PRNGKey(0)
    kx, kw = jax.random.split(key)

    B, n_feat, H, W = 2, 8, 16, 16
    x = jax.random.normal(kx, (B, n_feat, H, W), dtype=jnp.float32)
    w = 0.1 * jax.random.normal(kw, (n_feat // 2, n_feat, 3, 3), dtype=jnp.float32)

    out = jax.block_until_ready(jax.jit(downsample_forward)(x, w))
    assert out.shape == (B, 2 * n_feat, H // 2, W // 2), out.shape
    assert out.dtype == jnp.float32

    ref = jax.block_until_ready(jax.jit(downsample_ref)(x, w))
    err = float(jnp.max(jnp.abs(out - ref)))
    assert jnp.allclose(out, ref, atol=5e-3, rtol=5e-3), err

    print("KERNEL_OK")
</pallas_src>

<mosaic_0001>
module attributes {stable_mosaic.version = 11 : i64} {
  func.func @_conv3x3_kernel(%arg0: i32, %arg1: i32, %arg2: memref<1x18x18x8xf32, #tpu.memory_space<vmem>>, %arg3: memref<3x3x8x4xf32, #tpu.memory_space<vmem>>, %arg4: memref<1x16x16x4xf32, #tpu.memory_space<vmem>>) attributes {dimension_semantics = [#tpu.dimension_semantics<parallel>, #tpu.dimension_semantics<parallel>], iteration_bounds = array<i64: 2, 1>, scalar_prefetch = 0 : i64, scratch_operands = 0 : i64, tpu.core_type = #tpu.core_type<tc>, window_params = [{transform_indices = @transform_0, window_bounds = array<i64: 1, 18, 18, 8>}, {pipeline_mode = #tpu.pipeline_mode<synchronous>, transform_indices = @transform_1, window_bounds = array<i64: 3, 3, 8, 4>}, {transform_indices = @transform_2, window_bounds = array<i64: 1, 16, 16, 4>}]} {
    %c16_i32 = arith.constant 16 : i32
    %0 = arith.muli %arg1, %c16_i32 : i32
    %1 = tpu.assume_multiple %0, 16 : i32
    %cst = arith.constant 0.000000e+00 : f32
    %2 = vector.broadcast %cst : f32 to vector<256x4xf32>
    %c0_i32 = arith.constant 0 : i32
    %3 = arith.addi %1, %c0_i32 : i32
    %c0 = arith.constant 0 : index
    %4 = arith.index_cast %3 : i32 to index
    %c0_0 = arith.constant 0 : index
    %c0_1 = arith.constant 0 : index
    %5 = vector.load %arg2[%c0, %4, %c0_0, %c0_1] : memref<1x18x18x8xf32, #tpu.memory_space<vmem>>, vector<1x16x18x8xf32>
    %6 = vector.shape_cast %5 : vector<1x16x18x8xf32> to vector<16x18x8xf32>
    %7 = vector.extract_strided_slice %6 {offsets = [0, 0, 0], sizes = [16, 16, 8], strides = [1, 1, 1]} : vector<16x18x8xf32> to vector<16x16x8xf32>
    %8 = vector.shape_cast %7 : vector<16x16x8xf32> to vector<256x8xf32>
    %c0_2 = arith.constant 0 : index
    %c0_3 = arith.constant 0 : index
    %c0_4 = arith.constant 0 : index
    %c0_5 = arith.constant 0 : index
    %9 = vector.load %arg3[%c0_2, %c0_3, %c0_4, %c0_5] : memref<3x3x8x4xf32, #tpu.memory_space<vmem>>, vector<1x1x8x4xf32>
    %10 = vector.shape_cast %9 : vector<1x1x8x4xf32> to vector<8x4xf32>
    %cst_6 = arith.constant dense<0.000000e+00> : vector<256x4xf32>
    %11 = tpu.matmul %8, %10, %cst_6 {dimension_numbers = #tpu.dot_dimension_numbers<[1], [0], [0], [1], [0, 0, 1, 1], [], []>} : vector<256x8xf32>, vector<8x4xf32>, vector<256x4xf32> -> vector<256x4xf32>
    %12 = arith.addf %2, %11 : vector<256x4xf32>
    %13 = vector.extract_strided_slice %6 {offsets = [0, 1, 0], sizes = [16, 16, 8], strides = [1, 1, 1]} : vector<16x18x8xf32> to vector<16x16x8xf32>
    %14 = vector.shape_cast %13 : vector<16x16x8xf32> to vector<256x8xf32>
    %c0_7 = arith.constant 0 : index
    %c1 = arith.constant 1 : index
    %c0_8 = arith.constant 0 : index
    %c0_9 = arith.constant 0 : index
    %15 = vector.load %arg3[%c0_7, %c1, %c0_8, %c0_9] : memref<3x3x8x4xf32, #tpu.memory_space<vmem>>, vector<1x1x8x4xf32>
    %16 = vector.shape_cast %15 : vector<1x1x8x4xf32> to vector<8x4xf32>
    %cst_10 = arith.constant dense<0.000000e+00> : vector<256x4xf32>
    %17 = tpu.matmul %14, %16, %cst_10 {dimension_numbers = #tpu.dot_dimension_numbers<[1], [0], [0], [1], [0, 0, 1, 1], [], []>} : vector<256x8xf32>, vector<8x4xf32>, vector<256x4xf32> -> vector<256x4xf32>
    %18 = arith.addf %12, %17 : vector<256x4xf32>
    %19 = vector.extract_strided_slice %6 {offsets = [0, 2, 0], sizes = [16, 16, 8], strides = [1, 1, 1]} : vector<16x18x8xf32> to vector<16x16x8xf32>
    %20 = vector.shape_cast %19 : vector<16x16x8xf32> to vector<256x8xf32>
    %c0_11 = arith.constant 0 : index
    %c2 = arith.constant 2 : index
    %c0_12 = arith.constant 0 : index
    %c0_13 = arith.constant 0 : index
    %21 = vector.load %arg3[%c0_11, %c2, %c0_12, %c0_13] : memref<3x3x8x4xf32, #tpu.memory_space<vmem>>, vector<1x1x8x4xf32>
    %22 = vector.shape_cast %21 : vector<1x1x8x4xf32> to vector<8x4xf32>
    %cst_14 = arith.constant dense<0.000000e+00> : vector<256x4xf32>
    %23 = tpu.matmul %20, %22, %cst_14 {dimension_numbers = #tpu.dot_dimension_numbers<[1], [0], [0], [1], [0, 0, 1, 1], [], []>} : vector<256x8xf32>, vector<8x4xf32>, vector<256x4xf32> -> vector<256x4xf32>
    %24 = arith.addf %18, %23 : vector<256x4xf32>
    %c1_i32 = arith.constant 1 : i32
    %25 = arith.addi %1, %c1_i32 : i32
    %c0_15 = arith.constant 0 : index
    %26 = arith.index_cast %25 : i32 to index
    %c0_16 = arith.constant 0 : index
    %c0_17 = arith.constant 0 : index
    %27 = vector.load %arg2[%c0_15, %26, %c0_16, %c0_17] : memref<1x18x18x8xf32, #tpu.memory_space<vmem>>, vector<1x16x18x8xf32>
    %28 = vector.shape_cast %27 : vector<1x16x18x8xf32> to vector<16x18x8xf32>
    %29 = vector.extract_strided_slice %28 {offsets = [0, 0, 0], sizes = [16, 16, 8], strides = [1, 1, 1]} : vector<16x18x8xf32> to vector<16x16x8xf32>
    %30 = vector.shape_cast %29 : vector<16x16x8xf32> to vector<256x8xf32>
    %c1_18 = arith.constant 1 : index
    %c0_19 = arith.constant 0 : index
    %c0_20 = arith.constant 0 : index
    %c0_21 = arith.constant 0 : index
    %31 = vector.load %arg3[%c1_18, %c0_19, %c0_20, %c0_21] : memref<3x3x8x4xf32, #tpu.memory_space<vmem>>, vector<1x1x8x4xf32>
    %32 = vector.shape_cast %31 : vector<1x1x8x4xf32> to vector<8x4xf32>
    %cst_22 = arith.constant dense<0.000000e+00> : vector<256x4xf32>
    %33 = tpu.matmul %30, %32, %cst_22 {dimension_numbers = #tpu.dot_dimension_numbers<[1], [0], [0], [1], [0, 0, 1, 1], [], []>} : vector<256x8xf32>, vector<8x4xf32>, vector<256x4xf32> -> vector<256x4xf32>
    %34 = arith.addf %24, %33 : vector<256x4xf32>
    %35 = vector.extract_strided_slice %28 {offsets = [0, 1, 0], sizes = [16, 16, 8], strides = [1, 1, 1]} : vector<16x18x8xf32> to vector<16x16x8xf32>
    %36 = vector.shape_cast %35 : vector<16x16x8xf32> to vector<256x8xf32>
    %c1_23 = arith.constant 1 : index
    %c1_24 = arith.constant 1 : index
    %c0_25 = arith.constant 0 : index
    %c0_26 = arith.constant 0 : index
    %37 = vector.load %arg3[%c1_23, %c1_24, %c0_25, %c0_26] : memref<3x3x8x4xf32, #tpu.memory_space<vmem>>, vector<1x1x8x4xf32>
    %38 = vector.shape_cast %37 : vector<1x1x8x4xf32> to vector<8x4xf32>
    %cst_27 = arith.constant dense<0.000000e+00> : vector<256x4xf32>
    %39 = tpu.matmul %36, %38, %cst_27 {dimension_numbers = #tpu.dot_dimension_numbers<[1], [0], [0], [1], [0, 0, 1, 1], [], []>} : vector<256x8xf32>, vector<8x4xf32>, vector<256x4xf32> -> vector<256x4xf32>
    %40 = arith.addf %34, %39 : vector<256x4xf32>
    %41 = vector.extract_strided_slice %28 {offsets = [0, 2, 0], sizes = [16, 16, 8], strides = [1, 1, 1]} : vector<16x18x8xf32> to vector<16x16x8xf32>
    %42 = vector.shape_cast %41 : vector<16x16x8xf32> to vector<256x8xf32>
    %c1_28 = arith.constant 1 : index
    %c2_29 = arith.constant 2 : index
    %c0_30 = arith.constant 0 : index
    %c0_31 = arith.constant 0 : index
    %43 = vector.load %arg3[%c1_28, %c2_29, %c0_30, %c0_31] : memref<3x3x8x4xf32, #tpu.memory_space<vmem>>, vector<1x1x8x4xf32>
    %44 = vector.shape_cast %43 : vector<1x1x8x4xf32> to vector<8x4xf32>
    %cst_32 = arith.constant dense<0.000000e+00> : vector<256x4xf32>
    %45 = tpu.matmul %42, %44, %cst_32 {dimension_numbers = #tpu.dot_dimension_numbers<[1], [0], [0], [1], [0, 0, 1, 1], [], []>} : vector<256x8xf32>, vector<8x4xf32>, vector<256x4xf32> -> vector<256x4xf32>
    %46 = arith.addf %40, %45 : vector<256x4xf32>
    %c2_i32 = arith.constant 2 : i32
    %47 = arith.addi %1, %c2_i32 : i32
    %c0_33 = arith.constant 0 : index
    %48 = arith.index_cast %47 : i32 to index
    %c0_34 = arith.constant 0 : index
    %c0_35 = arith.constant 0 : index
    %49 = vector.load %arg2[%c0_33, %48, %c0_34, %c0_35] : memref<1x18x18x8xf32, #tpu.memory_space<vmem>>, vector<1x16x18x8xf32>
    %50 = vector.shape_cast %49 : vector<1x16x18x8xf32> to vector<16x18x8xf32>
    %51 = vector.extract_strided_slice %50 {offsets = [0, 0, 0], sizes = [16, 16, 8], strides = [1, 1, 1]} : vector<16x18x8xf32> to vector<16x16x8xf32>
    %52 = vector.shape_cast %51 : vector<16x16x8xf32> to vector<256x8xf32>
    %c2_36 = arith.constant 2 : index
    %c0_37 = arith.constant 0 : index
    %c0_38 = arith.constant 0 : index
    %c0_39 = arith.constant 0 : index
    %53 = vector.load %arg3[%c2_36, %c0_37, %c0_38, %c0_39] : memref<3x3x8x4xf32, #tpu.memory_space<vmem>>, vector<1x1x8x4xf32>
    %54 = vector.shape_cast %53 : vector<1x1x8x4xf32> to vector<8x4xf32>
    %cst_40 = arith.constant dense<0.000000e+00> : vector<256x4xf32>
    %55 = tpu.matmul %52, %54, %cst_40 {dimension_numbers = #tpu.dot_dimension_numbers<[1], [0], [0], [1], [0, 0, 1, 1], [], []>} : vector<256x8xf32>, vector<8x4xf32>, vector<256x4xf32> -> vector<256x4xf32>
    %56 = arith.addf %46, %55 : vector<256x4xf32>
    %57 = vector.extract_strided_slice %50 {offsets = [0, 1, 0], sizes = [16, 16, 8], strides = [1, 1, 1]} : vector<16x18x8xf32> to vector<16x16x8xf32>
    %58 = vector.shape_cast %57 : vector<16x16x8xf32> to vector<256x8xf32>
    %c2_41 = arith.constant 2 : index
    %c1_42 = arith.constant 1 : index
    %c0_43 = arith.constant 0 : index
    %c0_44 = arith.constant 0 : index
    %59 = vector.load %arg3[%c2_41, %c1_42, %c0_43, %c0_44] : memref<3x3x8x4xf32, #tpu.memory_space<vmem>>, vector<1x1x8x4xf32>
    %60 = vector.shape_cast %59 : vector<1x1x8x4xf32> to vector<8x4xf32>
    %cst_45 = arith.constant dense<0.000000e+00> : vector<256x4xf32>
    %61 = tpu.matmul %58, %60, %cst_45 {dimension_numbers = #tpu.dot_dimension_numbers<[1], [0], [0], [1], [0, 0, 1, 1], [], []>} : vector<256x8xf32>, vector<8x4xf32>, vector<256x4xf32> -> vector<256x4xf32>
    %62 = arith.addf %56, %61 : vector<256x4xf32>
    %63 = vector.extract_strided_slice %50 {offsets = [0, 2, 0], sizes = [16, 16, 8], strides = [1, 1, 1]} : vector<16x18x8xf32> to vector<16x16x8xf32>
    %64 = vector.shape_cast %63 : vector<16x16x8xf32> to vector<256x8xf32>
    %c2_46 = arith.constant 2 : index
    %c2_47 = arith.constant 2 : index
    %c0_48 = arith.constant 0 : index
    %c0_49 = arith.constant 0 : index
    %65 = vector.load %arg3[%c2_46, %c2_47, %c0_48, %c0_49] : memref<3x3x8x4xf32, #tpu.memory_space<vmem>>, vector<1x1x8x4xf32>
    %66 = vector.shape_cast %65 : vector<1x1x8x4xf32> to vector<8x4xf32>
    %cst_50 = arith.constant dense<0.000000e+00> : vector<256x4xf32>
    %67 = tpu.matmul %64, %66, %cst_50 {dimension_numbers = #tpu.dot_dimension_numbers<[1], [0], [0], [1], [0, 0, 1, 1], [], []>} : vector<256x8xf32>, vector<8x4xf32>, vector<256x4xf32> -> vector<256x4xf32>
    %68 = arith.addf %62, %67 : vector<256x4xf32>
    %69 = vector.shape_cast %68 : vector<256x4xf32> to vector<16x16x4xf32>
    %c0_51 = arith.constant 0 : index
    %c0_52 = arith.constant 0 : index
    %c0_53 = arith.constant 0 : index
    %c0_54 = arith.constant 0 : index
    %70 = vector.load %arg4[%c0_51, %c0_52, %c0_53, %c0_54] : memref<1x16x16x4xf32, #tpu.memory_space<vmem>>, vector<1x16x16x4xf32>
    %71 = vector.shape_cast %70 : vector<1x16x16x4xf32> to vector<16x16x4xf32>
    %72 = vector.shape_cast %69 : vector<16x16x4xf32> to vector<1x16x16x4xf32>
    tpu.vector_store %arg4[%c0_51, %c0_52, %c0_53, %c0_54], %72 {strides = array<i32>} : memref<1x16x16x4xf32, #tpu.memory_space<vmem>>, vector<1x16x16x4xf32>,
    return
  }
  func.func @transform_0(%arg0: i32, %arg1: i32) -> (i32, i32, i32, i32) {
    %c0_i32 = arith.constant 0 : i32
    %c0_i32_0 = arith.constant 0 : i32
    %c0_i32_1 = arith.constant 0 : i32
    %c0_i32_2 = arith.constant 0 : i32
    return %arg0, %c0_i32, %c0_i32_0, %c0_i32_1 : i32, i32, i32, i32
  }
  func.func @transform_1(%arg0: i32, %arg1: i32) -> (i32, i32, i32, i32) {
    %c0_i32 = arith.constant 0 : i32
    %c0_i32_0 = arith.constant 0 : i32
    %c0_i32_1 = arith.constant 0 : i32
    %c0_i32_2 = arith.constant 0 : i32
    %c0_i32_3 = arith.constant 0 : i32
    return %c0_i32, %c0_i32_0, %c0_i32_1, %c0_i32_2 : i32, i32, i32, i32
  }
  func.func @transform_2(%arg0: i32, %arg1: i32) -> (i32, i32, i32, i32) {
    %c0_i32 = arith.constant 0 : i32
    %c0_i32_0 = arith.constant 0 : i32
    %c0_i32_1 = arith.constant 0 : i32
    return %arg0, %arg1, %c0_i32, %c0_i32_0 : i32, i32, i32, i32
  }
}

</mosaic_0001>

<bundles_post_ra>
// kernel: downsample_forward.1
= control target key start
LH: loop header
LB: loop body
LE: loop exit
PB: predicated region body
PF: predicated region fallthrough
CT: control target
= control target key end

     0   :  { %s3398_s9 = smov 0   ;;  %s3400_s10 = smov 0   ;;  %s4839_s0 = inlined_call_operand.vmem [shape: f32[2,18,18,8], index: 0, kind: input, shape index: {}]   ;;  %s4840_s1 = inlined_call_operand.vmem [shape: f32[3,3,8,4], index: 1, kind: input, shape index: {}]   ;;  %s4841_s2 = inlined_call_operand.vmem [shape: f32[2,16,16,4], index: 2, kind: output, shape index: {}]  }
   0x1   :  { %s3402_s11 = smov 0  }
   0x2 LB: > { %s24_s12 = sadd.s32 1, %s3377_s10  ;;  %p2917_p0 = scmp.ge.s32.totalorder %s3381_s11, 1  ;;  %s3381_s11 = sphi %s3402_s11, %s12_s11   ;;  %s3377_s10 = sphi %s3400_s10, %s4973_s10   ;;  %s3373_s9 = sphi %s3398_s9, %s4972_s9  }
   0x3   : > { %p26_p1 = scmp.ge.s32.totalorder %s24_s12, 2  ;;  %p126_p2 = scmp.lt.s32.totalorder %s3381_s11, 3 }
   0x5   : > { %s4975_s12 = smov (%p26_p1, %s24_s12), 0  ;;  %p127_p3 = pnand %p2917_p0, %p126_p2 }
   0x7   : > { %130 = sbr.rel (%p127_p3) target bundleno = 730 (0x2da), region = 28 }
   0xc   : > { %v2921_v0 = vld [vmem:[%s4840_s1 + $0x8] sm:$0xff]  ;;  %p153_p4 = scmp.lt.s32.totalorder %s3373_s9, 1  ;;  %v2986_v1 = vld [vmem:[%s4840_s1 + $0x10] sm:$0xff]  ;;  %v3067_v2 = vld [vmem:[%s4840_s1 + $0x18] sm:$0xff]  ;;  %vm269_vm0 = vcmask 1046528   ;;  %vm352_vm1 = vcmask 64512  }
   0xd   : > { %3316 = vmatpush.msra.mxu1 %v2921_v0  ;;  %3317 = vmatpush.msra.mxu2 %v2921_v0  ;;  %v220_v3 = vld [vmem:[%s4840_s1] sm:$0xff]  ;;  %vm707_vm2 = vcmask 1045504   ;;  %vm2783_vm3 = vcmask 31744  }
   0xe   : > { %s4977_s9 = smov (!%p153_p4, %s3373_s9), 1  ;;  %3318 = vmatpush.msra.mxu3 %v2921_v0  ;;  %v3100_v4 = vld [vmem:[%s4840_s1 + $0x20] sm:$0xff]  ;;  %432 = vmatpush.msra.mxu0 %v2921_v0 }
   0xf   : > { %869 = vmatpush.msrb.mxu2 %v2986_v1  ;;  %609 = vmatpush.msrb.mxu1 %v220_v3  ;;  %s3319_s23 = smul.u32 432, %s4977_s9  ;;  %s3315_s7 = sshll.u32 %s4977_s9, 8 }
  0x10   : > { %1163 = vmatpush.msrb.mxu3 %v3067_v2  ;;  %1470 = vmatpush.msrb.mxu0 %v3100_v4  ;;  %s4584_s14 = scalar_lea.vmem %s4841_s2, %s3315_s7 }
  0x11   : > { %s3437_s26 = scalar_lea.vmem %s4839_s0, %s3319_s23 }
  0x12   : > { %v3440_v5 = vld [vmem:[%s3437_s26 + $0x60] sm:$0xff]  ;;  %v3443_v6 = vld [vmem:[%s3437_s26 + $0x68] sm:$0xff]  ;;  %v3468_v17 = vld [vmem:[%s3437_s26 + $0x70] sm:$0x3] }
  0x13   : > { %v3446_v7 = vld [vmem:[%s3437_s26 + $0xc0] sm:$0xff]  ;;  %v290_v8 = vrot.slane %v3440_v5, 1  ;;  %v3450_v9 = vrot.slane %v3443_v6, 1  ;;  %v3453_v10 = vld [vmem:[%s3437_s26 + $0xc8] sm:$0xff]  ;;  %v3478_v20 = vld [vmem:[%s3437_s26 + $0xd0] sm:$0x3] }
  0x14   : > { %v310_v11 = vrot.slane %v3446_v7, 1  ;;  %v3457_v12 = vld [vmem:[%s3437_s26 + $0x120] sm:$0xff]  ;;  %v3460_v13 = vld [vmem:[%s3437_s26 + $0x128] sm:$0xff]  ;;  %v3463_v14 = vrot.slane %v3453_v10, 1  ;;  %v3495_v26 = vld [vmem:[%s3437_s26 + $0x130] sm:$0x3] }
  0x15   : > { %4884 = vst [vmem:[#allocation2_spill] sm:$0xff] %v3457_v12  ;;  %v4842_v15 = vrot.slane %v3457_v12, 1  ;;  %v331_v16 = vrot.slane %v3460_v13, 1  ;;  %v3471_v18 = vld [vmem:[%s3437_s26] sm:$0xff]  ;;  %v3475_v19 = vsel %vm269_vm0, %v290_v8, %v3450_v9  ;;  %v3481_v21 = vld [vmem:[%s3437_s26 + $0x8] sm:$0xff]  ;;  %v293_v27 = vrot.slane %v3468_v17, 1 }
  0x16   : > { %4885 = vst [vmem:[#allocation3_spill] sm:$0xff] %v3460_v13  ;;  %v270_v22 = vrot.slane %v3471_v18, 1  ;;  %2930 = vmatmul.msk.f32.vlgmr.msra.gmra.mxu1 %vm352_vm1, %v3475_v19  ;;  %v3488_v23 = vsel %vm269_vm0, %v310_v11, %v3463_v14  ;;  %v271_v25 = vrot.slane %v3481_v21, 1  ;;  %v3502_v28 = vld [vmem:[%s3437_s26 + $0x10] sm:$0x3]  ;;  %v313_v29 = vrot.slane %v3478_v20, 1 }
  0x17   : > { %v332_v24 = vsel %vm269_vm0, %v4842_v15, %v331_v16  ;;  %4886 = vst [vmem:[#allocation4_spill] sm:$0xff] %v3495_v26  ;;  %2938 = vmatmul.msk.f32.vlgmr.msra.gmra.mxu2 %vm352_vm1, %v3488_v23  ;;  %v333_v31 = vrot.slane %v3495_v26, 1  ;;  %v273_v32 = vrot.slane %v3502_v28, 1  ;;  %v294_v33 = vsel %vm269_vm0, %v3450_v9, %v293_v27  ;;  %v3515_v36 = vld [vmem:[%s3437_s26 + $0x78] sm:$0xff]  ;;  %v3518_v37 = vld [vmem:[%s3437_s26 + $0x80] sm:$0xff]  ;;  %v3606_v4 = vld [vmem:[%s3437_s26 + $0x90] sm:$0xff] }
  0x18   : > { %2946 = vmatmul.msk.f32.vlgmr.msra.gmra.mxu3 %vm352_vm1, %v332_v24  ;;  %v272_v30 = vsel %vm269_vm0, %v270_v22, %v271_v25  ;;  %v314_v34 = vsel %vm269_vm0, %v3463_v14, %v313_v29  ;;  %v3521_v38 = vld [vmem:[%s3437_s26 + $0xd8] sm:$0xff]  ;;  %v3524_v39 = vld [vmem:[%s3437_s26 + $0xe0] sm:$0xff]  ;;  %v295_v43 = vrot.slane %v3515_v36, 1  ;;  %v3538_v44 = vrot.slane %v3518_v37, 1  ;;  %v3572_v56 = vld [vmem:[%s3437_s26 + $0x88] sm:$0x3] }
  0x19   : > { %2922 = vmatmul.msk.f32.vlgmr.msra.gmra.mxu0 %vm352_vm1, %v272_v30  ;;  %v334_v35 = vsel %vm269_vm0, %v331_v16, %v333_v31  ;;  %v3527_v40 = vld [vmem:[%s3437_s26 + $0x138] sm:$0xff]  ;;  %v3530_v41 = vld [vmem:[%s3437_s26 + $0x140] sm:$0xff]  ;;  %v274_v42 = vsel %vm269_vm0, %v271_v25, %v273_v32  ;;  %v315_v47 = vrot.slane %v3521_v38, 1  ;;  %v3548_v48 = vrot.slane %v3524_v39, 1  ;;  %v3575_v57 = vld [vmem:[%s3437_s26 + $0xe8] sm:$0x3] }
  0x1a   : > { %4887 = vst [vmem:[#allocation5_spill] sm:$0xff] %v3527_v40  ;;  %v3541_v45 = vld [vmem:[%s3437_s26 + $0x18] sm:$0xff]  ;;  %v3544_v46 = vld [vmem:[%s3437_s26 + $0x20] sm:$0xff]  ;;  %v335_v49 = vrot.slane %v3527_v40, 1  ;;  %v3552_v50 = vrot.slane %v3530_v41, 1  ;;  %v3561_v53 = vsel %vm269_vm0, %v295_v43, %v3538_v44  ;;  %v298_v60 = vrot.slane %v3572_v56, 1 }
  0x1b   : > { %4888 = vst [vmem:[#allocation6_spill] sm:$0xff] %v3530_v41  ;;  %v275_v51 = vrot.slane %v3541_v45, 1  ;;  %v3557_v52 = vrot.slane %v3544_v46, 1  ;;  %v3565_v54 = vsel %vm269_vm0, %v315_v47, %v3548_v48  ;;  %v3578_v58 = vld [vmem:[%s3437_s26 + $0x148] sm:$0x3]  ;;  %v318_v62 = vrot.slane %v3575_v57, 1 }
  0x1c   : > { %4889 = vst [vmem:[#allocation7_spill] sm:$0xff] %v3552_v50  ;;  %v3569_v55 = vsel %vm269_vm0, %v335_v49, %v3552_v50  ;;  %v3592_v61 = vld [vmem:[%s3437_s26 + $0x28] sm:$0x3]  ;;  %v338_v63 = vrot.slane %v3578_v58, 1  ;;  %v299_v1 = vsel %vm269_vm0, %v3538_v44, %v298_v60  ;;  %v3609_v8 = vld [vmem:[%s3437_s26 + $0x98] sm:$0xff]  ;;  %v3612_v11 = vld [vmem:[%s3437_s26 + $0xf0] sm:$0xff] }
  0x1d   : > { %4890 = vst [vmem:[#allocation8_spill] sm:$0xff] %v3569_v55  ;;  %v3584_v59 = vsel %vm269_vm0, %v275_v51, %v3557_v52  ;;  %v278_v0 = vrot.slane %v3592_v61, 1  ;;  %v319_v2 = vsel %vm269_vm0, %v3548_v48, %v318_v62  ;;  %v3615_v16 = vld [vmem:[%s3437_s26 + $0xf8] sm:$0xff]  ;;  %v3618_v22 = vld [vmem:[%s3437_s26 + $0x150] sm:$0xff]  ;;  %v300_v27 = vrot.slane %v3606_v4, 1 }
  0x1e   : > { %2931 = vmatmul.msk.f32.gmra.mxu1 %vm352_vm1, %v294_v33  ;;  %4891 = vst [vmem:[#allocation9_spill] sm:$0xff] %v3578_v58  ;;  %v339_v3 = vsel %vm269_vm0, %v3552_v50, %v338_v63  ;;  %v3621_v24 = vld [vmem:[%s3437_s26 + $0x158] sm:$0xff]  ;;  %v3630_v29 = vrot.slane %v3609_v8, 1  ;;  %v3633_v30 = vld [vmem:[%s3437_s26 + $0x30] sm:$0xff]  ;;  %v320_v32 = vrot.slane %v3612_v11, 1  ;;  %v3640_v33 = vrot.slane %v3615_v16, 1 }
  0x1f   : > { %2939 = vmatmul.msk.f32.gmra.mxu2 %vm352_vm1, %v314_v34  ;;  %4892 = vst [vmem:[#allocation10_spill] sm:$0xff] %v3618_v22  ;;  %v279_v25 = vsel %vm269_vm0, %v3557_v52, %v278_v0  ;;  %v3636_v31 = vld [vmem:[%s3437_s26 + $0x38] sm:$0xff]  ;;  %v340_v34 = vrot.slane %v3618_v22, 1  ;;  %v3664_v60 = vld [vmem:[%s3437_s26 + $0xa0] sm:$0x3]  ;;  %v3719_v58 = vld [vmem:[%s3437_s26 + $0x168] sm:$0xff] }
  0x20   : > { %2947 = vmatmul.msk.f32.gmra.mxu3 %vm352_vm1, %v334_v35  ;;  %4893 = vst [vmem:[#allocation11_spill] sm:$0xff] %v3621_v24  ;;  %v3644_v35 = vrot.slane %v3621_v24, 1  ;;  %v3649_v43 = vrot.slane %v3636_v31, 1  ;;  %v3653_v47 = vsel %vm269_vm0, %v300_v27, %v3630_v29  ;;  %v3657_v49 = vsel %vm269_vm0, %v320_v32, %v3640_v33  ;;  %v3667_v62 = vld [vmem:[%s3437_s26 + $0x100] sm:$0x3]  ;;  %v3133_v27 = vld [vmem:[%s4840_s1 + $0x28] sm:$0xff] }
  0x21   : > { %2923 = vmatmul.msk.f32.gmra.mxu0 %vm352_vm1, %v274_v42  ;;  %v280_v42 = vrot.slane %v3633_v30, 1  ;;  %4896 = vst [vmem:[#allocation14_spill] sm:$0xff] %v3667_v62  ;;  %v3670_v63 = vld [vmem:[%s3437_s26 + $0x160] sm:$0x3]  ;;  %v323_v32 = vrot.slane %v3667_v62, 1  ;;  %1761 = vmatpush.msra.mxu1 %v3133_v27  ;;  %v3716_v27 = vld [vmem:[%s3437_s26 + $0x110] sm:$0xff] }
  0x22   : > { %4894 = vst [vmem:[#allocation12_spill] sm:$0xff] %v3644_v35  ;;  %v3661_v51 = vsel %vm269_vm0, %v340_v34, %v3644_v35  ;;  %v343_v34 = vrot.slane %v3670_v63, 1  ;;  %v3722_v22 = vld [vmem:[%s3437_s26 + $0x170] sm:$0xff] }
  0x23   : > { %4895 = vst [vmem:[#allocation13_spill] sm:$0xff] %v3661_v51  ;;  %v3676_v0 = vsel %vm269_vm0, %v280_v42, %v3649_v43  ;;  %v324_v24 = vsel %vm269_vm0, %v3640_v33, %v323_v32  ;;  %v3737_v41 = vld [vmem:[%s3437_s26 + $0x50] sm:$0xff]  ;;  %v3748_v50 = vrot.slane %v3722_v22, 1 }
  0x24   : > { %4897 = vst [vmem:[#allocation15_spill] sm:$0xff] %v3670_v63  ;;  %v3707_v63 = vld [vmem:[%s3437_s26 + $0xa8] sm:$0xff]  ;;  %v3753_v26 = vrot.slane %v3737_v41, 1 }
  0x25   : > { %4899 = vst [vmem:[#allocation17_spill] sm:$0xff] %v3716_v27  ;;  %v305_v32 = vrot.slane %v3707_v63, 1 }
  0x26   : > { %2932 = vmatmul.msk.f32.gmra.mxu1 %vm352_vm1, %v3561_v53  ;;  %4900 = vst [vmem:[#allocation18_spill] sm:$0xff] %v3719_v58 }
  0x27   : > { %2940 = vmatmul.msk.f32.gmra.mxu2 %vm352_vm1, %v3565_v54  ;;  %4901 = vst [vmem:[#allocation19_spill] sm:$0xff] %v3722_v22 }
  0x28   : > { %2948 = vmatmul.msk.f32.gmra.mxu3 %vm352_vm1, %v3569_v55 }
  0x29   : > { %2924 = vmatmul.msk.f32.gmra.mxu0 %vm352_vm1, %v3584_v59 }
  0x2e   : > { %2933 = vmatmul.msk.f32.gmra.mxu1 %vm352_vm1, %v299_v1  ;;  %v3679_v1 = vld [vmem:[%s3437_s26 + $0x40] sm:$0x3] }
  0x2f   : > { %2941 = vmatmul.msk.f32.gmra.mxu2 %vm352_vm1, %v319_v2  ;;  %v303_v2 = vrot.slane %v3664_v60, 1  ;;  %v283_v42 = vrot.slane %v3679_v1, 1 }
  0x30   : > { %2949 = vmatmul.msk.f32.gmra.mxu3 %vm352_vm1, %v339_v3  ;;  %v3214_v3 = vld [vmem:[%s4840_s1 + $0x30] sm:$0xff] }
  0x31   : > { %2925 = vmatmul.msk.f32.gmra.mxu0 %vm352_vm1, %v279_v25  ;;  %v3247_v25 = vld [vmem:[%s4840_s1 + $0x38] sm:$0xff]  ;;  %2055 = vmatpush.msra.mxu2 %v3214_v3  ;;  %v304_v15 = vsel %vm269_vm0, %v3630_v29, %v303_v2  ;;  %v3710_v3 = vld [vmem:[%s3437_s26 + $0xb0] sm:$0xff]  ;;  %v284_v2 = vsel %vm269_vm0, %v3649_v43, %v283_v42  ;;  %v345_v42 = vrot.slane %v3719_v58, 1 }
  0x32   : > { %2362 = vmatpush.msra.mxu3 %v3247_v25  ;;  %v3713_v25 = vld [vmem:[%s3437_s26 + $0x108] sm:$0xff]  ;;  %v3774_v58 = vld [vmem:[%s3437_s26 + $0x178] sm:$0x3] }
  0x33   : > { %4898 = vst [vmem:[#allocation16_spill] sm:$0xff] %v3713_v25  ;;  %v3765_v22 = vsel %vm269_vm0, %v345_v42, %v3748_v50  ;;  %v3786_v42 = vld [vmem:[%s3437_s26 + $0x58] sm:$0x3] }
  0x34   : > { %4903 = vst [vmem:[#allocation21_spill] sm:$0xff] %v3765_v22  ;;  %v288_v62 = vrot.slane %v3786_v42, 1 }
  0x35   : > { %4905 = vst [vmem:[#allocation23_spill] sm:$0xff] %v3774_v58 }
  0x36   : > { %2934 = vmatmul.msk.f32.gmra.mxu1 %vm352_vm1, %v3653_v47 }
  0x37   : > { %2942 = vmatmul.msk.f32.gmra.mxu2 %vm352_vm1, %v3657_v49 }
  0x38   : > { %2950 = vmatmul.msk.f32.gmra.mxu3 %vm352_vm1, %v3661_v51  ;;  %v344_v51 = vsel %vm269_vm0, %v3644_v35, %v343_v34  ;;  %v3731_v34 = vrot.slane %v3710_v3, 1  ;;  %v3734_v35 = vld [vmem:[%s3437_s26 + $0x48] sm:$0xff] }
  0x39   : > { %2926 = vmatmul.msk.f32.gmra.mxu0 %vm352_vm1, %v3676_v0  ;;  %v285_v55 = vrot.slane %v3734_v35, 1 }
  0x3a   : > { %v3757_v40 = vsel %vm269_vm0, %v305_v32, %v3731_v34 }
  0x3b   : > { %v287_v32 = vsel %vm269_vm0, %v285_v55, %v3753_v26 }
  0x3e   : > { %2935 = vmatmul.msk.f32.gmra.mxu1 %vm352_vm1, %v304_v15  ;;  %v3280_v15 = vld [vmem:[%s4840_s1 + $0x40] sm:$0xff] }
  0x3f   : > { %2943 = vmatmul.msk.f32.gmra.mxu2 %vm352_vm1, %v324_v24  ;;  %v325_v24 = vrot.slane %v3713_v25, 1  ;;  %2653 = vmatpush.msra.mxu0 %v3280_v15  ;;  %v3768_v15 = vld [vmem:[%s3437_s26 + $0xb8] sm:$0x3]  ;;  %v709_v25 = vrot.slane %v3481_v21, 2 }
  0x40   : > { %2951 = vmatmul.msk.f32.gmra.mxu3 %vm352_vm1, %v344_v51  ;;  %v3744_v51 = vrot.slane %v3716_v27, 1  ;;  %v348_v27 = vrot.slane %v3774_v58, 1  ;;  %v708_v58 = vrot.slane %v3471_v18, 2 }
  0x41   : > { %2927 = vmatmul.msk.f32.gmra.mxu0 %vm352_vm1, %v284_v2  ;;  %v3771_v2 = vld [vmem:[%s3437_s26 + $0x118] sm:$0x3] }
  0x42   : > { %v3761_v13 = vsel %vm269_vm0, %v325_v24, %v3744_v51  ;;  %4904 = vst [vmem:[#allocation22_spill] sm:$0xff] %v3771_v2  ;;  %v308_v24 = vrot.slane %v3768_v15, 1  ;;  %v328_v12 = vrot.slane %v3771_v2, 1  ;;  %v289_v2 = vsel %vm269_vm0, %v3753_v26, %v288_v62 }
  0x43   : > { %4902 = vst [vmem:[#allocation20_spill] sm:$0xff] %v3761_v13 }
  0x44   : > { %v309_v55 = vsel %vm269_vm0, %v3731_v34, %v308_v24 }
  0x46   : > { %2936 = vmatmul.msk.f32.gmra.mxu1 %vm352_vm1, %v3757_v40 }
  0x47   : > { %2944 = vmatmul.msk.f32.gmra.mxu2 %vm352_vm1, %v3761_v13  ;;  %v329_v13 = vsel %vm269_vm0, %v3744_v51, %v328_v12  ;;  %v710_v12 = vsel %vm707_vm2, %v708_v58, %v709_v25 }
  0x48   : > { %2952 = vmatmul.msk.f32.gmra.mxu3 %vm352_vm1, %v3765_v22  ;;  %v349_v22 = vsel %vm269_vm0, %v3748_v50, %v348_v27  ;;  %v3829_v27 = vrot.slane %v3544_v46, 2 }
  0x49   : > { %2928 = vmatmul.msk.f32.gmra.mxu0 %vm352_vm1, %v287_v32 }
  0x4e   : > { %2937 = vmatmul.msk.f32.gmra.mxu1 %vm352_vm1, %v309_v55 }
  0x4f   : > { %2945 = vmatmul.msk.f32.gmra.mxu2 %vm352_vm1, %v329_v13  ;;  %v3813_v13 = vld [vmem:[%s3437_s26 + $0x28] sm:$0x3] }
  0x50   : > { %2953 = vmatmul.msk.f32.gmra.mxu3 %vm352_vm1, %v349_v22  ;;  %v711_v22 = vrot.slane %v3502_v28, 2  ;;  %v1312_v62 = vrot.slane %v3813_v13, 1  ;;  %v1600_v28 = vrot.slane %v3541_v45, 2 }
  0x51   : > { %2929 = vmatmul.msk.f32.gmra.mxu0 %vm352_vm1, %v289_v2 }
  0x52   : > { %v712_v58 = vsel %vm707_vm2, %v709_v25, %v711_v22 }
  0x56   : > { %2954 = vmatmul.msk.f32.vlgmr.msrb.gmra.mxu1 %vm352_vm1, %v3471_v18  ;;  %v1313_v18 = vsel %vm269_vm0, %v3557_v52, %v1312_v62  ;;  %v716_v52 = vrot.slane %v3592_v61, 2  ;;  %v1605_v61 = vrot.slane %v3633_v30, 2 }
  0x57   : > { %2987 = vmatmul.msk.f32.vlgmr.msrb.gmra.mxu2 %vm352_vm1, %v710_v12 }
  0x58   : > { %3068 = vmatmul.msk.f32.vlgmr.msrb.gmra.mxu3 %vm352_vm1, %v3541_v45  ;;  %v717_v2 = vsel %vm707_vm2, %v3829_v27, %v716_v52  ;;  %v731_v52 = vrot.slane %v3468_v17, 2 }
  0x59   : > { %3101 = vmatmul.msk.f32.vlgmr.msrb.gmra.mxu0 %vm352_vm1, %v3584_v59  ;;  %v3834_v59 = vsel %vm707_vm2, %v1600_v28, %v3829_v27  ;;  %v3033_v28 = vld [vmem:[%s3437_s26 + $0x88] sm:$0x3] }
  0x5e   : > { %2955 = vmatmul.msk.f32.gmra.mxu1 %vm352_vm1, %v3481_v21  ;;  %v3843_v21 = vld [vmem:[%s3437_s26 + $0x40] sm:$0x3] }
  0x5f   : > { %2988 = vmatmul.msk.f32.gmra.mxu2 %vm352_vm1, %v712_v58  ;;  %v1317_v25 = vrot.slane %v3843_v21, 1 }
  0x60   : > { %3069 = vmatmul.msk.f32.gmra.mxu3 %vm352_vm1, %v3544_v46 }
  0x61   : > { %3102 = vmatmul.msk.f32.gmra.mxu0 %vm352_vm1, %v1313_v18 }
  0x66   : > { %2956 = vmatmul.msk.f32.gmra.mxu1 %vm352_vm1, %v3541_v45  ;;  %v1318_v45 = vsel %vm269_vm0, %v3649_v43, %v1317_v25  ;;  %v721_v43 = vrot.slane %v3679_v1, 2  ;;  %v1610_v1 = vrot.slane %v3734_v35, 2 }
  0x67   : > { %2989 = vmatmul.msk.f32.gmra.mxu2 %vm352_vm1, %v3834_v59 }
  0x68   : > { %3070 = vmatmul.msk.f32.gmra.mxu3 %vm352_vm1, %v3633_v30 }
  0x69   : > { %3103 = vmatmul.msk.f32.gmra.mxu0 %vm352_vm1, %v3676_v0  ;;  %v3860_v0 = vrot.slane %v3636_v31, 2 }
  0x6b   : > { %v3865_v24 = vsel %vm707_vm2, %v1605_v61, %v3860_v0  ;;  %v722_v12 = vsel %vm707_vm2, %v3860_v0, %v721_v43 }
  0x6e   : > { %2957 = vmatmul.msk.f32.gmra.mxu1 %vm352_vm1, %v3544_v46  ;;  %v3874_v46 = vld [vmem:[%s3437_s26 + $0x58] sm:$0x3] }
  0x6f   : > { %2990 = vmatmul.msk.f32.gmra.mxu2 %vm352_vm1, %v717_v2  ;;  %v1322_v55 = vrot.slane %v3874_v46, 1 }
  0x70   : > { %3071 = vmatmul.msk.f32.gmra.mxu3 %vm352_vm1, %v3636_v31 }
  0x71   : > { %3104 = vmatmul.msk.f32.gmra.mxu0 %vm352_vm1, %v1318_v45  ;;  %v1332_v45 = vrot.slane %v3033_v28, 1 }
  0x73   : > { %v1333_v17 = vsel %vm269_vm0, %v3538_v44, %v1332_v45  ;;  %v4005_v45 = vrot.slane %v3609_v8, 2 }
  0x75   : > { %4910 = vst [vmem:[#allocation28_spill] sm:$0xff] %v4005_v45 }
  0x76   : > { %2958 = vmatmul.msk.f32.gmra.mxu1 %vm352_vm1, %v3633_v30  ;;  %v1323_v30 = vsel %vm269_vm0, %v3753_v26, %v1322_v55  ;;  %v3904_v26 = vld [vmem:[%s3437_s26 + $0x70] sm:$0x3]  ;;  %v3961_v55 = vrot.slane %v3518_v37, 2 }
  0x77   : > { %2991 = vmatmul.msk.f32.gmra.mxu2 %vm352_vm1, %v3865_v24  ;;  %v1327_v62 = vrot.slane %v3904_v26, 1 }
  0x78   : > { %3072 = vmatmul.msk.f32.gmra.mxu3 %vm352_vm1, %v3734_v35  ;;  %4907 = vst [vmem:[#allocation25_spill] sm:$0xff] %v3961_v55 }
  0x79   : > { %3105 = vmatmul.msk.f32.gmra.mxu0 %vm352_vm1, %v287_v32  ;;  %v3890_v32 = vrot.slane %v3737_v41, 2 }
  0x7b   : > { %v3895_v22 = vsel %vm707_vm2, %v1610_v1, %v3890_v32 }
  0x7e   : > { %2959 = vmatmul.msk.f32.gmra.mxu1 %vm352_vm1, %v3636_v31  ;;  %v726_v31 = vrot.slane %v3786_v42, 2  ;;  %v1615_v42 = vrot.slane %v3440_v5, 2 }
  0x7f   : > { %2992 = vmatmul.msk.f32.gmra.mxu2 %vm352_vm1, %v722_v12 }
  0x80   : > { %3073 = vmatmul.msk.f32.gmra.mxu3 %vm352_vm1, %v3737_v41  ;;  %v727_v58 = vsel %vm707_vm2, %v3890_v32, %v726_v31  ;;  %v3036_v31 = vld [vmem:[%s3437_s26 + $0xa0] sm:$0x3] }
  0x81   : > { %3106 = vmatmul.msk.f32.gmra.mxu0 %vm352_vm1, %v1323_v30 }
  0x86   : > { %2960 = vmatmul.msk.f32.gmra.mxu1 %vm352_vm1, %v3734_v35  ;;  %v1328_v35 = vsel %vm269_vm0, %v3450_v9, %v1327_v62  ;;  %v736_v62 = vrot.slane %v3572_v56, 2 }
  0x87   : > { %2993 = vmatmul.msk.f32.gmra.mxu2 %vm352_vm1, %v3895_v22 }
  0x88   : > { %3074 = vmatmul.msk.f32.gmra.mxu3 %vm352_vm1, %v3440_v5  ;;  %v737_v28 = vsel %vm707_vm2, %v3961_v55, %v736_v62  ;;  %v741_v62 = vrot.slane %v3664_v60, 2 }
  0x89   : > { %3107 = vmatmul.msk.f32.gmra.mxu0 %vm352_vm1, %v3475_v19  ;;  %v3921_v19 = vrot.slane %v3443_v6, 2 }
  0x8b   : > { %v732_v61 = vsel %vm707_vm2, %v3921_v19, %v731_v52 }
  0x8e   : > { %2961 = vmatmul.msk.f32.gmra.mxu1 %vm352_vm1, %v3737_v41  ;;  %v3928_v41 = vsel %vm707_vm2, %v1615_v42, %v3921_v19  ;;  %v1337_v42 = vrot.slane %v3036_v31, 1  ;;  %v3039_v31 = vld [vmem:[%s3437_s26 + $0xb8] sm:$0x3] }
  0x8f   : > { %2994 = vmatmul.msk.f32.gmra.mxu2 %vm352_vm1, %v727_v58 }
  0x90   : > { %3075 = vmatmul.msk.f32.gmra.mxu3 %vm352_vm1, %v3443_v6  ;;  %v1338_v56 = vsel %vm269_vm0, %v3630_v29, %v1337_v42 }
  0x91   : > { %3108 = vmatmul.msk.f32.gmra.mxu0 %vm352_vm1, %v1328_v35 }
  0x93   : > { %v3924_v18 = vpop.f32.mrf.mxu1 }
  0x96   : > { %2962 = vmatmul.msk.f32.gmra.mxu1 %vm352_vm1, %v3440_v5  ;;  %v3932_v9 = vpop.f32.mrf.mxu0 }
  0x97   : > { %2995 = vmatmul.msk.f32.gmra.mxu2 %vm352_vm1, %v3928_v41 }
  0x98   : > { %3076 = vmatmul.msk.f32.gmra.mxu3 %vm352_vm1, %v3515_v36 }
  0x99   : > { %3109 = vmatmul.msk.f32.gmra.mxu0 %vm352_vm1, %v3561_v53  ;;  %v1620_v53 = vrot.slane %v3515_v36, 2 }
  0x9a   : > { %v3942_v25 = vpop.f32.mrf.mxu2 }
  0x9b   : > { %v3944_v2 = vpop.f32.mrf.mxu3  ;;  %v3946_v5 = vpop.f32.mrf.mxu1  ;;  %v3972_v44 = vsel %vm707_vm2, %v1620_v53, %v3961_v55 }
  0x9c   : > { %4906 = vst [vmem:[#allocation24_spill] sm:$0xff] %v3944_v2 }
  0x9e   : > { %2963 = vmatmul.msk.f32.gmra.mxu1 %vm352_vm1, %v3443_v6  ;;  %v3952_v43 = vpop.f32.mrf.mxu0 }
  0x9f   : > { %2996 = vmatmul.msk.f32.gmra.mxu2 %vm352_vm1, %v732_v61 }
  0xa0   : > { %3077 = vmatmul.msk.f32.gmra.mxu3 %vm352_vm1, %v3518_v37 }
  0xa1   : > { %3110 = vmatmul.msk.f32.gmra.mxu0 %vm352_vm1, %v1333_v17 }
  0xa2   : > { %v3964_v12 = vpop.f32.mrf.mxu2 }
  0xa3   : > { %v3966_v6 = vpop.f32.mrf.mxu3  ;;  %v3968_v30 = vpop.f32.mrf.mxu1 }
  0xa4   : > { %4908 = vst [vmem:[#allocation26_spill] sm:$0xff] %v3966_v6 }
  0xa6   : > { %2964 = vmatmul.msk.f32.gmra.mxu1 %vm352_vm1, %v3515_v36  ;;  %v3976_v1 = vpop.f32.mrf.mxu0 }
  0xa7   : > { %2997 = vmatmul.msk.f32.gmra.mxu2 %vm352_vm1, %v3972_v44 }
  0xa8   : > { %3078 = vmatmul.msk.f32.gmra.mxu3 %vm352_vm1, %v3606_v4 }
  0xa9   : > { %3111 = vmatmul.msk.f32.gmra.mxu0 %vm352_vm1, %v3653_v47  ;;  %v1625_v47 = vrot.slane %v3606_v4, 2 }
  0xaa   : > { %v3986_v58 = vpop.f32.mrf.mxu2 }
  0xab   : > { %v3988_v35 = vpop.f32.mrf.mxu3  ;;  %v3990_v36 = vpop.f32.mrf.mxu1  ;;  %v4016_v29 = vsel %vm707_vm2, %v1625_v47, %v4005_v45  ;;  %v742_v47 = vsel %vm707_vm2, %v4005_v45, %v741_v62 }
  0xac   : > { %4909 = vst [vmem:[#allocation27_spill] sm:$0xff] %v3988_v35 }
  0xad   : > { %4912 = vst [vmem:[#allocation30_spill] sm:$0xff] %v4016_v29 }
  0xae   : > { %2965 = vmatmul.msk.f32.gmra.mxu1 %vm352_vm1, %v3518_v37  ;;  %v3996_v52 = vpop.f32.mrf.mxu0 }
  0xaf   : > { %2998 = vmatmul.msk.f32.gmra.mxu2 %vm352_vm1, %v737_v28 }
  0xb0   : > { %3079 = vmatmul.msk.f32.gmra.mxu3 %vm352_vm1, %v3609_v8 }
  0xb1   : > { %3112 = vmatmul.msk.f32.gmra.mxu0 %vm352_vm1, %v1338_v56  ;;  %v1342_v56 = vrot.slane %v3039_v31, 1  ;;  %v4049_v31 = vrot.slane %v3710_v3, 2 }
  0xb2   : > { %v4008_v61 = vpop.f32.mrf.mxu2 }
  0xb3   : > { %v4010_v37 = vpop.f32.mrf.mxu3  ;;  %v4012_v17 = vpop.f32.mrf.mxu1  ;;  %v1343_v60 = vsel %vm269_vm0, %v3731_v34, %v1342_v56  ;;  %4914 = vst [vmem:[#allocation32_spill] sm:$0xff] %v4049_v31 }
  0xb4   : > { %4911 = vst [vmem:[#allocation29_spill] sm:$0xff] %v4010_v37 }
  0xb6   : > { %2966 = vmatmul.msk.f32.gmra.mxu1 %vm352_vm1, %v3606_v4  ;;  %v4020_v53 = vpop.f32.mrf.mxu0 }
  0xb7   : > { %2999 = vmatmul.msk.f32.gmra.mxu2 %vm352_vm1, %v4016_v29 }
  0xb8   : > { %3080 = vmatmul.msk.f32.gmra.mxu3 %vm352_vm1, %v3707_v63 }
  0xb9   : > { %3113 = vmatmul.msk.f32.gmra.mxu0 %vm352_vm1, %v3757_v40  ;;  %v1630_v40 = vrot.slane %v3707_v63, 2 }
  0xba   : > { %v4030_v42 = vpop.f32.mrf.mxu2 }
  0xbb   : > { %v4032_v28 = vpop.f32.mrf.mxu3  ;;  %v4034_v4 = vpop.f32.mrf.mxu1  ;;  %v4060_v34 = vsel %vm707_vm2, %v1630_v40, %v4049_v31 }
  0xbc   : > { %4913 = vst [vmem:[#allocation31_spill] sm:$0xff] %v4032_v28 }
  0xbd   : > { %4916 = vst [vmem:[#allocation34_spill] sm:$0xff] %v4060_v34 }
  0xbe   : > { %2967 = vmatmul.msk.f32.gmra.mxu1 %vm352_vm1, %v3609_v8  ;;  %v4040_v37 = vpop.f32.mrf.mxu0 }
  0xbf   : > { %3000 = vmatmul.msk.f32.gmra.mxu2 %vm352_vm1, %v742_v47  ;;  %v3042_v47 = vld [vmem:[%s3437_s26 + $0xd0] sm:$0x3] }
  0xc0   : > { %3081 = vmatmul.msk.f32.gmra.mxu3 %vm352_vm1, %v3710_v3  ;;  %v1347_v45 = vrot.slane %v3042_v47, 1  ;;  %v4093_v47 = vrot.slane %v3453_v10, 2 }
  0xc1   : > { %3114 = vmatmul.msk.f32.gmra.mxu0 %vm352_vm1, %v1343_v60  ;;  %v746_v60 = vrot.slane %v3768_v15, 2 }
  0xc2   : > { %v4052_v62 = vpop.f32.mrf.mxu2  ;;  %v1348_v15 = vsel %vm269_vm0, %v3463_v14, %v1347_v45  ;;  %v3045_v45 = vld [vmem:[%s3437_s26 + $0xe8] sm:$0x3] }
  0xc3   : > { %v4054_v8 = vpop.f32.mrf.mxu3  ;;  %v4056_v28 = vpop.f32.mrf.mxu1  ;;  %v747_v35 = vsel %vm707_vm2, %v4049_v31, %v746_v60  ;;  %v1352_v29 = vrot.slane %v3045_v45, 1  ;;  %v756_v45 = vrot.slane %v3575_v57, 2 }
  0xc4   : > { %4915 = vst [vmem:[#allocation33_spill] sm:$0xff] %v4054_v8 }
  0xc6   : > { %2968 = vmatmul.msk.f32.gmra.mxu1 %vm352_vm1, %v3707_v63  ;;  %v4064_v56 = vpop.f32.mrf.mxu0 }
  0xc7   : > { %3001 = vmatmul.msk.f32.gmra.mxu2 %vm352_vm1, %v4060_v34 }
  0xc8   : > { %3082 = vmatmul.msk.f32.gmra.mxu3 %vm352_vm1, %v3446_v7 }
  0xc9   : > { %3115 = vmatmul.msk.f32.gmra.mxu0 %vm352_vm1, %v3488_v23  ;;  %v1635_v23 = vrot.slane %v3446_v7, 2 }
  0xca   : > { %v4074_v8 = vpop.f32.mrf.mxu2 }
  0xcb   : > { %v4076_v40 = vpop.f32.mrf.mxu3  ;;  %v4078_v63 = vpop.f32.mrf.mxu1  ;;  %v4102_v14 = vsel %vm707_vm2, %v1635_v23, %v4093_v47 }
  0xcc   : > { %4917 = vst [vmem:[#allocation35_spill] sm:$0xff] %v4076_v40 }
  0xcd   : > { %4919 = vst [vmem:[#allocation37_spill] sm:$0xff] %v4102_v14 }
  0xce   : > { %2969 = vmatmul.msk.f32.gmra.mxu1 %vm352_vm1, %v3710_v3  ;;  %v4084_v34 = vpop.f32.mrf.mxu0 }
  0xcf   : > { %3002 = vmatmul.msk.f32.gmra.mxu2 %vm352_vm1, %v747_v35 }
  0xd0   : > { %3083 = vmatmul.msk.f32.gmra.mxu3 %vm352_vm1, %v3453_v10 }
  0xd1   : > { %3116 = vmatmul.msk.f32.gmra.mxu0 %vm352_vm1, %v1348_v15  ;;  %v751_v15 = vrot.slane %v3478_v20, 2  ;;  %v1353_v20 = vsel %vm269_vm0, %v3548_v48, %v1352_v29 }
  0xd2   : > { %v4096_v60 = vpop.f32.mrf.mxu2 }
  0xd3   : > { %v4098_v3 = vpop.f32.mrf.mxu3  ;;  %v611_v40 = vpop.f32.mrf.mxu1  ;;  %v752_v55 = vsel %vm707_vm2, %v4093_v47, %v751_v15 }
  0xd4   : > { %4918 = vst [vmem:[#allocation36_spill] sm:$0xff] %v4098_v3  ;;  %v612_v3 = vadd.f32 %v611_v40, %v3932_v9  ;;  %v4128_v40 = vrot.slane %v3524_v39, 2 }
  0xd6   : > { %2970 = vmatmul.msk.f32.gmra.mxu1 %vm352_vm1, %v3446_v7  ;;  %v1472_v35 = vpop.f32.mrf.mxu0 }
  0xd7   : > { %3003 = vmatmul.msk.f32.gmra.mxu2 %vm352_vm1, %v4102_v14 }
  0xd8   : > { %3084 = vmatmul.msk.f32.gmra.mxu3 %vm352_vm1, %v3521_v38 }
  0xd9   : > { %3117 = vmatmul.msk.f32.gmra.mxu0 %vm352_vm1, %v3565_v54  ;;  %v1640_v54 = vrot.slane %v3521_v38, 2 }
  0xda   : > { %v871_v23 = vpop.f32.mrf.mxu2 }
  0xdb   : > { %v1165_v31 = vpop.f32.mrf.mxu3  ;;  %v967_v6 = vadd.f32 %v871_v23, %v612_v3  ;;  %v614_v7 = vpop.f32.mrf.mxu1 }
  0xdd   : > { %v1261_v14 = vadd.f32 %v1165_v31, %v967_v6  ;;  %v615_v6 = vadd.f32 %v614_v7, %v3952_v43  ;;  %v3048_v43 = vld [vmem:[%s3437_s26 + $0x100] sm:$0x3] }
  0xde   : > { %2971 = vmatmul.msk.f32.gmra.mxu1 %vm352_vm1, %v3453_v10  ;;  %v1475_v2 = vpop.f32.mrf.mxu0 }
  0xdf   : > { %v4121_v9 = vadd.f32 %v1472_v35, %v1261_v14  ;;  %3004 = vmatmul.msk.f32.gmra.mxu2 %vm352_vm1, %v752_v55  ;;  %v4134_v55 = vsel %vm707_vm2, %v1640_v54, %v4128_v40  ;;  %v757_v54 = vsel %vm707_vm2, %v4128_v40, %v756_v45 }
  0xe0   : > { %3085 = vmatmul.msk.f32.gmra.mxu3 %vm352_vm1, %v3524_v39 }
  0xe1   : > { %3118 = vmatmul.msk.f32.gmra.mxu0 %vm352_vm1, %v1353_v20 }
  0xe2   : > { %v874_v10 = vpop.f32.mrf.mxu2 }
  0xe3   : > { %v1168_v31 = vpop.f32.mrf.mxu3  ;;  %v968_v48 = vadd.f32 %v874_v10, %v615_v6  ;;  %v617_v29 = vpop.f32.mrf.mxu1 }
  0xe4   : > { %v618_v15 = vadd.f32 %v617_v29, %v3976_v1 }
  0xe5   : > { %v1262_v3 = vadd.f32 %v1168_v31, %v968_v48  ;;  %v4162_v31 = vrot.slane %v3615_v16, 2 }
  0xe6   : > { %2972 = vmatmul.msk.f32.gmra.mxu1 %vm352_vm1, %v3521_v38  ;;  %v1478_v14 = vpop.f32.mrf.mxu0  ;;  %v1357_v38 = vrot.slane %v3048_v43, 1 }
  0xe7   : > { %v4138_v35 = vadd.f32 %v1475_v2, %v1262_v3  ;;  %3005 = vmatmul.msk.f32.gmra.mxu2 %vm352_vm1, %v4134_v55 }
  0xe8   : > { %3086 = vmatmul.msk.f32.gmra.mxu3 %vm352_vm1, %v3612_v11  ;;  %v1358_v57 = vsel %vm269_vm0, %v3640_v33, %v1357_v38 }
  0xe9   : > { %3119 = vmatmul.msk.f32.gmra.mxu0 %vm352_vm1, %v3657_v49  ;;  %v1645_v49 = vrot.slane %v3612_v11, 2 }
  0xea   : > { %v877_v23 = vpop.f32.mrf.mxu2 }
  0xeb   : > { %v1171_v7 = vpop.f32.mrf.mxu3  ;;  %v969_v20 = vadd.f32 %v877_v23, %v618_v15  ;;  %v620_v2 = vpop.f32.mrf.mxu1  ;;  %v3051_v23 = vld [vmem:[%s3437_s26 + $0x118] sm:$0x3] }
  0xec   : > { %v621_v48 = vadd.f32 %v620_v2, %v3996_v52  ;;  %v4920_v52 = vld [vmem:[#allocation16_spill] sm:$0xff] }
  0xed   : > { %v1263_v6 = vadd.f32 %v1171_v7, %v969_v20  ;;  %v4921_v7 = vld [vmem:[#allocation14_spill] sm:$0xff]  ;;  %v4922_v2 = vld [vmem:[#allocation20_spill] sm:$0xff] }
  0xee   : > { %2973 = vmatmul.msk.f32.gmra.mxu1 %vm352_vm1, %v3524_v39  ;;  %v1481_v10 = vpop.f32.mrf.mxu0  ;;  %v761_v38 = vrot.slane %v4921_v7, 2 }
  0xef   : > { %v4155_v1 = vadd.f32 %v1478_v14, %v1263_v6  ;;  %3006 = vmatmul.msk.f32.gmra.mxu2 %vm352_vm1, %v757_v54  ;;  %v4168_v14 = vsel %vm707_vm2, %v1645_v49, %v4162_v31  ;;  %v1362_v6 = vrot.slane %v3051_v23, 1 }
  0xf0   : > { %3087 = vmatmul.msk.f32.gmra.mxu3 %vm352_vm1, %v3615_v16  ;;  %v762_v49 = vsel %vm707_vm2, %v4162_v31, %v761_v38 }
  0xf1   : > { %3120 = vmatmul.msk.f32.gmra.mxu0 %vm352_vm1, %v1358_v57 }
  0xf2   : > { %v880_v39 = vpop.f32.mrf.mxu2 }
  0xf3   : > { %v1174_v29 = vpop.f32.mrf.mxu3  ;;  %v970_v33 = vadd.f32 %v880_v39, %v621_v48  ;;  %v623_v3 = vpop.f32.mrf.mxu1 }
  0xf4   : > { %v624_v20 = vadd.f32 %v623_v3, %v4020_v53  ;;  %v3053_v3 = vld [vmem:[%s3437_s26 + $0x128] sm:$0xff] }
  0xf5   : > { %v1264_v43 = vadd.f32 %v1174_v29, %v970_v33  ;;  %v1363_v29 = vsel %vm269_vm0, %v3744_v51, %v1362_v6  ;;  %v4923_v33 = vld [vmem:[#allocation17_spill] sm:$0xff]  ;;  %v4924_v6 = vld [vmem:[#allocation2_spill] sm:$0xff] }
  0xf6   : > { %2974 = vmatmul.msk.f32.gmra.mxu1 %vm352_vm1, %v3612_v11  ;;  %v1484_v45 = vpop.f32.mrf.mxu0  ;;  %v4197_v23 = vrot.slane %v4923_v33, 2 }
  0xf7   : > { %v4172_v15 = vadd.f32 %v1481_v10, %v1264_v43  ;;  %3007 = vmatmul.msk.f32.gmra.mxu2 %vm352_vm1, %v4168_v14  ;;  %v1650_v43 = vrot.slane %v4920_v52, 2 }
  0xf8   : > { %3088 = vmatmul.msk.f32.gmra.mxu3 %vm352_vm1, %v4920_v52 }
  0xf9   : > { %3121 = vmatmul.msk.f32.gmra.mxu0 %vm352_vm1, %v4922_v2  ;;  %v4203_v2 = vsel %vm707_vm2, %v1650_v43, %v4197_v23 }
  0xfa   : > { %v883_v54 = vpop.f32.mrf.mxu2 }
  0xfb   : > { %v1177_v11 = vpop.f32.mrf.mxu3  ;;  %v971_v10 = vadd.f32 %v883_v54, %v624_v20  ;;  %v626_v57 = vpop.f32.mrf.mxu1 }
  0xfd   : > { %v1265_v48 = vadd.f32 %v1177_v11, %v971_v10  ;;  %v4925_v10 = vrot.slane %v4924_v6, 1 }
  0xfe   : > { %2975 = vmatmul.msk.f32.gmra.mxu1 %vm352_vm1, %v3615_v16  ;;  %v1487_v39 = vpop.f32.mrf.mxu0  ;;  %v627_v16 = vadd.f32 %v626_v57, %v4040_v37 }
  0xff   : > { %v4189_v53 = vadd.f32 %v1484_v45, %v1265_v48  ;;  %3008 = vmatmul.msk.f32.gmra.mxu2 %vm352_vm1, %v762_v49  ;;  %v1365_v45 = vrot.slane %v3053_v3, 1  ;;  %v3054_v49 = vld [vmem:[%s3437_s26 + $0x130] sm:$0x3]  ;;  %v4927_v48 = vld [vmem:[#allocation22_spill] sm:$0xff] }
 0x100   : > { %3089 = vmatmul.msk.f32.gmra.mxu3 %vm352_vm1, %v4923_v33 }
 0x101   : > { %3122 = vmatmul.msk.f32.gmra.mxu0 %vm352_vm1, %v1363_v29  ;;  %v1366_v37 = vsel %vm269_vm0, %v4925_v10, %v1365_v45  ;;  %v766_v29 = vrot.slane %v4927_v48, 2 }
 0x102   : > { %v886_v7 = vpop.f32.mrf.mxu2 }
 0x103   : > { %v1180_v51 = vpop.f32.mrf.mxu3  ;;  %v972_v38 = vadd.f32 %v886_v7, %v627_v16  ;;  %v629_v20 = vpop.f32.mrf.mxu1  ;;  %v1367_v7 = vrot.slane %v3054_v49, 1 }
 0x104   : > { %v630_v43 = vadd.f32 %v629_v20, %v4064_v56  ;;  %v4881_v56 = vrot.slane %v4924_v6, 2  ;;  %v4928_v20 = vld [vmem:[#allocation3_spill] sm:$0xff] }
 0x105   : > { %v1266_v54 = vadd.f32 %v1180_v51, %v972_v38 }
 0x106   : > { %2976 = vmatmul.msk.f32.gmra.mxu1 %vm352_vm1, %v4920_v52  ;;  %v1490_v11 = vpop.f32.mrf.mxu0 }
 0x107   : > { %v4210_v57 = vadd.f32 %v1487_v39, %v1266_v54  ;;  %3009 = vmatmul.msk.f32.gmra.mxu2 %vm352_vm1, %v4203_v2  ;;  %v767_v39 = vsel %vm707_vm2, %v4197_v23, %v766_v29 }
 0x108   : > { %3090 = vmatmul.msk.f32.gmra.mxu3 %vm352_vm1, %v4924_v6 }
 0x109   : > { %4926 = vst [vmem:[#allocation16_spill] sm:$0xff] %v4210_v57  ;;  %3123 = vmatmul.msk.f32.gmra.mxu0 %vm352_vm1, %v1366_v37  ;;  %v1368_v57 = vsel %vm269_vm0, %v1365_v45, %v1367_v7  ;;  %v769_v37 = vrot.slane %v4928_v20, 2  ;;  %v4931_v7 = vld [vmem:[#allocation4_spill] sm:$0xff] }
 0x10a   : > { %v889_v52 = vpop.f32.mrf.mxu2 }
 0x10b   : > { %v1183_v16 = vpop.f32.mrf.mxu3  ;;  %v973_v51 = vadd.f32 %v889_v52, %v630_v43  ;;  %v632_v38 = vpop.f32.mrf.mxu1  ;;  %v770_v45 = vsel %vm707_vm2, %v4881_v56, %v769_v37  ;;  %v4933_v56 = vld [vmem:[#allocation7_spill] sm:$0xff] }
 0x10c   : > { %v633_v49 = vadd.f32 %v632_v38, %v4084_v34  ;;  %v4930_v34 = vld [vmem:[#allocation5_spill] sm:$0xff] }
 0x10d   : > { %v1267_v54 = vadd.f32 %v1183_v16, %v973_v51  ;;  %v771_v51 = vrot.slane %v4931_v7, 2 }
 0x10e   : > { %2977 = vmatmul.msk.f32.gmra.mxu1 %vm352_vm1, %v4923_v33  ;;  %v1493_v10 = vpop.f32.mrf.mxu0 }
 0x10f   : > { %v4225_v48 = vadd.f32 %v1490_v11, %v1267_v54  ;;  %3010 = vmatmul.msk.f32.gmra.mxu2 %vm352_vm1, %v767_v39  ;;  %v4932_v39 = vld [vmem:[#allocation8_spill] sm:$0xff] }
 0x110   : > { %3091 = vmatmul.msk.f32.gmra.mxu3 %vm352_vm1, %v3053_v3 }
 0x111   : > { %3124 = vmatmul.msk.f32.gmra.mxu0 %vm352_vm1, %v1368_v57  ;;  %v3057_v57 = vld [vmem:[%s3437_s26 + $0x148] sm:$0x3] }
 0x112   : > { %v892_v29 = vpop.f32.mrf.mxu2 }
 0x113   : > { %v1186_v33 = vpop.f32.mrf.mxu3  ;;  %v974_v43 = vadd.f32 %v892_v29, %v633_v49  ;;  %v635_v52 = vpop.f32.mrf.mxu1  ;;  %v1372_v29 = vrot.slane %v3057_v57, 1 }
 0x114   : > { %v636_v38 = vadd.f32 %v635_v52, %v3924_v18  ;;  %v4934_v18 = vld [vmem:[#allocation6_spill] sm:$0xff]  ;;  %v1660_v52 = vrot.slane %v4930_v34, 2 }
 0x115   : > { %v1268_v11 = vadd.f32 %v1186_v33, %v974_v43  ;;  %v1373_v7 = vsel %vm269_vm0, %v4933_v56, %v1372_v29  ;;  %v3060_v29 = vld [vmem:[%s3437_s26 + $0x160] sm:$0x3] }
 0x116   : > { %2978 = vmatmul.msk.f32.gmra.mxu1 %vm352_vm1, %v4924_v6  ;;  %v1496_v3 = vpop.f32.mrf.mxu0 }
 0x117   : > { %v4238_v16 = vadd.f32 %v1493_v10, %v1268_v11  ;;  %3011 = vmatmul.msk.f32.gmra.mxu2 %vm352_vm1, %v770_v45  ;;  %v772_v10 = vsel %vm707_vm2, %v769_v37, %v771_v51  ;;  %v4260_v37 = vrot.slane %v4934_v18, 2 }
 0x118   : > { %3092 = vmatmul.msk.f32.gmra.mxu3 %vm352_vm1, %v4930_v34 }
 0x119   : > { %4929 = vst [vmem:[#allocation14_spill] sm:$0xff] %v4238_v16  ;;  %3125 = vmatmul.msk.f32.gmra.mxu0 %vm352_vm1, %v4932_v39 }
 0x11a   : > { %v895_v54 = vpop.f32.mrf.mxu2 }
 0x11b   : > { %v1189_v49 = vpop.f32.mrf.mxu3  ;;  %v975_v33 = vadd.f32 %v895_v54, %v636_v38  ;;  %v638_v43 = vpop.f32.mrf.mxu1  ;;  %v4266_v38 = vsel %vm707_vm2, %v1660_v52, %v4260_v37 }
 0x11c   : > { %v639_v57 = vadd.f32 %v638_v43, %v3946_v5  ;;  %v4935_v5 = vld [vmem:[#allocation10_spill] sm:$0xff] }
 0x11d   : > { %v1269_v11 = vadd.f32 %v1189_v49, %v975_v33  ;;  %v4936_v33 = vld [vmem:[#allocation9_spill] sm:$0xff] }
 0x11e   : > { %2979 = vmatmul.msk.f32.gmra.mxu1 %vm352_vm1, %v4928_v20  ;;  %v1499_v45 = vpop.f32.mrf.mxu0  ;;  %v776_v43 = vrot.slane %v4936_v33, 2 }
 0x11f   : > { %v4253_v16 = vadd.f32 %v1496_v3, %v1269_v11  ;;  %3012 = vmatmul.msk.f32.gmra.mxu2 %vm352_vm1, %v772_v10  ;;  %v4937_v11 = vld [vmem:[#allocation13_spill] sm:$0xff] }
 0x120   : > { %3093 = vmatmul.msk.f32.gmra.mxu3 %vm352_vm1, %v4934_v18 }
 0x121   : > { %3126 = vmatmul.msk.f32.gmra.mxu0 %vm352_vm1, %v1373_v7 }
 0x122   : > { %v898_v20 = vpop.f32.mrf.mxu2 }
 0x123   : > { %v1192_v51 = vpop.f32.mrf.mxu3  ;;  %v976_v56 = vadd.f32 %v898_v20, %v639_v57  ;;  %v641_v3 = vpop.f32.mrf.mxu1  ;;  %v777_v20 = vsel %vm707_vm2, %v4260_v37, %v776_v43 }
 0x124   : > { %v642_v10 = vadd.f32 %v641_v3, %v3968_v30  ;;  %v4939_v3 = vld [vmem:[#allocation11_spill] sm:$0xff] }
 0x125   : > { %v1270_v39 = vadd.f32 %v1192_v51, %v976_v56  ;;  %v4294_v43 = vrot.slane %v4939_v3, 2 }
 0x126   : > { %2980 = vmatmul.msk.f32.gmra.mxu1 %vm352_vm1, %v4930_v34  ;;  %v1502_v54 = vpop.f32.mrf.mxu0  ;;  %v1377_v34 = vrot.slane %v3060_v29, 1  ;;  %v1665_v29 = vrot.slane %v4935_v5, 2 }
 0x127   : > { %v4270_v49 = vadd.f32 %v1499_v45, %v1270_v39  ;;  %3013 = vmatmul.msk.f32.gmra.mxu2 %vm352_vm1, %v4266_v38  ;;  %v4938_v39 = vld [vmem:[#allocation12_spill] sm:$0xff]  ;;  %4940 = vst [vmem:[#allocation20_spill] sm:$0xff] %v4294_v43 }
 0x128   : > { %3094 = vmatmul.msk.f32.gmra.mxu3 %vm352_vm1, %v4935_v5  ;;  %v1378_v33 = vsel %vm269_vm0, %v4938_v39, %v1377_v34 }
 0x129   : > { %3127 = vmatmul.msk.f32.gmra.mxu0 %vm352_vm1, %v4937_v11 }
 0x12a   : > { %v901_v7 = vpop.f32.mrf.mxu2 }
 0x12b   : > { %v1195_v52 = vpop.f32.mrf.mxu3  ;;  %v977_v57 = vadd.f32 %v901_v7, %v642_v10  ;;  %v644_v45 = vpop.f32.mrf.mxu1 }
 0x12c   : > { %v645_v10 = vadd.f32 %v644_v45, %v3990_v36  ;;  %v4942_v36 = vld [vmem:[#allocation18_spill] sm:$0xff]  ;;  %v3063_v45 = vld [vmem:[%s3437_s26 + $0x178] sm:$0x3] }
 0x12d   : > { %v1271_v51 = vadd.f32 %v1195_v52, %v977_v57  ;;  %v4300_v52 = vsel %vm707_vm2, %v1665_v29, %v4294_v43  ;;  %v4944_v29 = vld [vmem:[#allocation21_spill] sm:$0xff] }
 0x12e   : > { %2981 = vmatmul.msk.f32.gmra.mxu1 %vm352_vm1, %v4934_v18  ;;  %v1505_v56 = vpop.f32.mrf.mxu0 }
 0x12f   : > { %v4287_v30 = vadd.f32 %v1502_v54, %v1271_v51  ;;  %3014 = vmatmul.msk.f32.gmra.mxu2 %vm352_vm1, %v777_v20  ;;  %v4943_v51 = vld [vmem:[#allocation15_spill] sm:$0xff] }
 0x130   : > { %3095 = vmatmul.msk.f32.gmra.mxu3 %vm352_vm1, %v4939_v3  ;;  %v781_v39 = vrot.slane %v4943_v51, 2 }
 0x131   : > { %3128 = vmatmul.msk.f32.gmra.mxu0 %vm352_vm1, %v1378_v33 }
 0x132   : > { %v904_v18 = vpop.f32.mrf.mxu2 }
 0x133   : > { %v1198_v11 = vpop.f32.mrf.mxu3  ;;  %v978_v7 = vadd.f32 %v904_v18, %v645_v10  ;;  %v647_v54 = vpop.f32.mrf.mxu1 }
 0x134   : > { %v648_v33 = vadd.f32 %v647_v54, %v4012_v17 }
 0x135   : > { %v1272_v34 = vadd.f32 %v1198_v11, %v978_v7  ;;  %v782_v7 = vsel %vm707_vm2, %v4294_v43, %v781_v39 }
 0x136   : > { %2982 = vmatmul.msk.f32.gmra.mxu1 %vm352_vm1, %v4935_v5  ;;  %v1508_v57 = vpop.f32.mrf.mxu0 }
 0x137   : > { %v4304_v20 = vadd.f32 %v1505_v56, %v1272_v34  ;;  %3015 = vmatmul.msk.f32.gmra.mxu2 %vm352_vm1, %v4300_v52  ;;  %v1382_v56 = vrot.slane %v3063_v45, 1  ;;  %v3065_v45 = vld [vmem:[%s3437_s26 + $0x188] sm:$0xff] }
 0x138   : > { %3096 = vmatmul.msk.f32.gmra.mxu3 %vm352_vm1, %v4942_v36 }
 0x139   : > { %4941 = vst [vmem:[#allocation17_spill] sm:$0xff] %v4304_v20  ;;  %3129 = vmatmul.msk.f32.gmra.mxu0 %vm352_vm1, %v4944_v29  ;;  %v1383_v17 = vsel %vm269_vm0, %v3748_v50, %v1382_v56  ;;  %v4946_v29 = vld [vmem:[#allocation19_spill] sm:$0xff]  ;;  %v1385_v56 = vrot.slane %v3065_v45, 1 }
 0x13a   : > { %v907_v10 = vpop.f32.mrf.mxu2  ;;  %v4329_v39 = vrot.slane %v4946_v29, 2 }
 0x13b   : > { %v1201_v5 = vpop.f32.mrf.mxu3  ;;  %v979_v18 = vadd.f32 %v907_v10, %v648_v33  ;;  %v650_v11 = vpop.f32.mrf.mxu1  ;;  %v1670_v33 = vrot.slane %v4942_v36, 2 }
 0x13c   : > { %v651_v10 = vadd.f32 %v650_v11, %v4034_v4 }
 0x13d   : > { %v1273_v34 = vadd.f32 %v1201_v5, %v979_v18 }
 0x13e   : > { %2983 = vmatmul.msk.f32.gmra.mxu1 %vm352_vm1, %v4939_v3  ;;  %v1511_v51 = vpop.f32.mrf.mxu0  ;;  %v3064_v3 = vld [vmem:[%s3437_s26 + $0x180] sm:$0xff] }
 0x13f   : > { %v4321_v54 = vadd.f32 %v1508_v57, %v1273_v34  ;;  %3016 = vmatmul.msk.f32.gmra.mxu2 %vm352_vm1, %v782_v7  ;;  %v1384_v5 = vrot.slane %v3064_v3, 1  ;;  %v4336_v34 = vsel %vm707_vm2, %v1670_v33, %v4329_v39 }
 0x140   : > { %3097 = vmatmul.msk.f32.gmra.mxu3 %vm352_vm1, %v4946_v29  ;;  %4947 = vst [vmem:[#allocation22_spill] sm:$0xff] %v4336_v34 }
 0x141   : > { %4945 = vst [vmem:[#allocation2_spill] sm:$0xff] %v4321_v54  ;;  %3130 = vmatmul.msk.f32.gmra.mxu0 %vm352_vm1, %v1383_v17  ;;  %v1386_v4 = vsel %vm269_vm0, %v1384_v5, %v1385_v56  ;;  %v3066_v17 = vld [vmem:[%s3437_s26 + $0x190] sm:$0x3] }
 0x142   : > { %v910_v50 = vpop.f32.mrf.mxu2 }
 0x143   : > { %v1204_v57 = vpop.f32.mrf.mxu3  ;;  %v980_v18 = vadd.f32 %v910_v50, %v651_v10  ;;  %v653_v7 = vpop.f32.mrf.mxu1  ;;  %v4949_v10 = vld [vmem:[#allocation23_spill] sm:$0xff] }
 0x144   : > { %v786_v33 = vrot.slane %v4949_v10, 2  ;;  %v654_v50 = vadd.f32 %v653_v7, %v4056_v28 }
 0x145   : > { %v1274_v54 = vadd.f32 %v1204_v57, %v980_v18  ;;  %v1387_v18 = vrot.slane %v3066_v17, 1 }
 0x146   : > { %2984 = vmatmul.msk.f32.gmra.mxu1 %vm352_vm1, %v4942_v36  ;;  %v1514_v20 = vpop.f32.mrf.mxu0 }
 0x147   : > { %v4341_v11 = vadd.f32 %v1511_v51, %v1274_v54  ;;  %3017 = vmatmul.msk.f32.gmra.mxu2 %vm352_vm1, %v4336_v34  ;;  %v787_v51 = vsel %vm707_vm2, %v4329_v39, %v786_v33  ;;  %v3167_v34 = vld [vmem:[%s3437_s26 + $0x38] sm:$0xff]  ;;  %v1388_v10 = vsel %vm269_vm0, %v1385_v56, %v1387_v18  ;;  %v3168_v18 = vld [vmem:[%s3437_s26 + $0x40] sm:$0x3] }
 0x148   : > { %3098 = vmatmul.msk.f32.gmra.mxu3 %vm352_vm1, %v3064_v3 }
 0x149   : > { %4948 = vst [vmem:[#allocation3_spill] sm:$0xff] %v4341_v11  ;;  %3131 = vmatmul.msk.f32.gmra.mxu0 %vm352_vm1, %v1386_v4  ;;  %v3166_v11 = vld [vmem:[%s3437_s26 + $0x30] sm:$0xff]  ;;  %v2202_v4 = vrot.slane %v3167_v34, 1 }
 0x14a   : > { %v913_v36 = vpop.f32.mrf.mxu2  ;;  %v2201_v7 = vrot.slane %v3166_v11, 1 }
 0x14b   : > { %v1207_v57 = vpop.f32.mrf.mxu3  ;;  %v981_v43 = vadd.f32 %v913_v36, %v654_v50  ;;  %v656_v5 = vpop.f32.mrf.mxu1  ;;  %v2492_v50 = vrot.slane %v3166_v11, 2 }
 0x14c   : > { %v657_v17 = vadd.f32 %v656_v5, %v4078_v63  ;;  %v2203_v56 = vsel %vm269_vm0, %v2201_v7, %v2202_v4  ;;  %v1603_v5 = vrot.slane %v3813_v13, 2 }
 0x14d   : > { %v1275_v54 = vadd.f32 %v1207_v57, %v981_v43 }
 0x14e   : > { %2985 = vmatmul.msk.f32.gmra.mxu1 %vm352_vm1, %v4946_v29  ;;  %v1517_v3 = vpop.f32.mrf.mxu0  ;;  %v2493_v29 = vrot.slane %v3167_v34, 2 }
 0x14f   : > { %v4357_v28 = vadd.f32 %v1514_v20, %v1275_v54  ;;  %3018 = vmatmul.msk.f32.gmra.mxu2 %vm352_vm1, %v787_v51  ;;  %v2204_v54 = vrot.slane %v3168_v18, 1 }
 0x150   : > { %3099 = vmatmul.msk.f32.gmra.mxu3 %vm352_vm1, %v3065_v45  ;;  %v2494_v51 = vsel %vm707_vm2, %v2492_v50, %v2493_v29 }
 0x151   : > { %3132 = vmatmul.msk.f32.gmra.mxu0 %vm352_vm1, %v1388_v10  ;;  %v2205_v50 = vsel %vm269_vm0, %v2202_v4, %v2204_v54 }
 0x152   : > { %v916_v43 = vpop.f32.mrf.mxu2 }
 0x153   : > { %v1210_v33 = vpop.f32.mrf.mxu3  ;;  %v982_v36 = vadd.f32 %v916_v43, %v657_v17  ;;  %v659_v57 = vpop.f32.mrf.mxu1  ;;  %v2495_v17 = vrot.slane %v3168_v18, 2 }
 0x154   : > { %v660_v10 = vadd.f32 %v659_v57, %v3942_v25 }
 0x155   : > { %v1276_v20 = vadd.f32 %v1210_v33, %v982_v36  ;;  %v3169_v36 = vld [vmem:[%s3437_s26 + $0x48] sm:$0xff]  ;;  %v2496_v25 = vsel %vm707_vm2, %v2493_v29, %v2495_v17 }
 0x156   : > { %3134 = vmatmul.msk.f32.vlgmr.msra.gmra.mxu1 %vm352_vm1, %v3834_v59  ;;  %v1520_v45 = vpop.f32.mrf.mxu0 }
 0x157   : > { %v4368_v63 = vadd.f32 %v1517_v3, %v1276_v20  ;;  %3215 = vmatmul.msk.f32.vlgmr.msra.gmra.mxu2 %vm352_vm1, %v3166_v11  ;;  %v1604_v3 = vsel %vm707_vm2, %v3829_v27, %v1603_v5  ;;  %v2206_v20 = vrot.slane %v3169_v36, 1  ;;  %v2497_v5 = vrot.slane %v3169_v36, 2 }
 0x158   : > { %3248 = vmatmul.msk.f32.vlgmr.msra.gmra.mxu3 %vm352_vm1, %v2203_v56  ;;  %v3170_v56 = vld [vmem:[%s3437_s26 + $0x50] sm:$0xff] }
 0x159   : > { %3281 = vmatmul.msk.f32.vlgmr.msra.gmra.mxu0 %vm352_vm1, %v2494_v51  ;;  %v2207_v18 = vrot.slane %v3170_v56, 1  ;;  %v2498_v54 = vrot.slane %v3170_v56, 2 }
 0x15a   : > { %v919_v7 = vpop.f32.mrf.mxu2 }
 0x15b   : > { %v1213_v59 = vpop.f32.mrf.mxu3  ;;  %v983_v43 = vadd.f32 %v919_v7, %v660_v10  ;;  %v662_v33 = vpop.f32.mrf.mxu1  ;;  %v2208_v29 = vsel %vm269_vm0, %v2206_v20, %v2207_v18  ;;  %v2499_v17 = vsel %vm707_vm2, %v2497_v5, %v2498_v54 }
 0x15c   : > { %v663_v27 = vadd.f32 %v662_v33, %v3964_v12 }
 0x15d   : > { %v1277_v11 = vadd.f32 %v1213_v59, %v983_v43  ;;  %v3171_v59 = vld [vmem:[%s3437_s26 + $0x58] sm:$0x3]  ;;  %v1608_v43 = vrot.slane %v3843_v21, 2 }
 0x15e   : > { %3135 = vmatmul.msk.f32.gmra.mxu1 %vm352_vm1, %v1604_v3  ;;  %v1523_v13 = vpop.f32.mrf.mxu0  ;;  %v2209_v33 = vrot.slane %v3171_v59, 1 }
 0x15f   : > { %v4382_v57 = vadd.f32 %v1520_v45, %v1277_v11  ;;  %3216 = vmatmul.msk.f32.gmra.mxu2 %vm352_vm1, %v3167_v34  ;;  %v2500_v11 = vrot.slane %v3171_v59, 2 }
 0x160   : > { %3249 = vmatmul.msk.f32.gmra.mxu3 %vm352_vm1, %v2205_v50 }
 0x161   : > { %3282 = vmatmul.msk.f32.gmra.mxu0 %vm352_vm1, %v2496_v25 }
 0x162   : > { %v922_v4 = vpop.f32.mrf.mxu2 }
 0x163   : > { %v1216_v51 = vpop.f32.mrf.mxu3  ;;  %v984_v10 = vadd.f32 %v922_v4, %v663_v27  ;;  %v665_v7 = vpop.f32.mrf.mxu1  ;;  %v2210_v27 = vsel %vm269_vm0, %v2207_v18, %v2209_v33  ;;  %v3172_v4 = vld [vmem:[%s3437_s26 + $0x60] sm:$0xff]  ;;  %v3174_v33 = vld [vmem:[%s3437_s26 + $0x70] sm:$0x3] }
 0x164   : > { %v666_v3 = vadd.f32 %v665_v7, %v3986_v58  ;;  %v2501_v58 = vsel %vm707_vm2, %v2498_v54, %v2500_v11 }
 0x165   : > { %v1278_v45 = vadd.f32 %v1216_v51, %v984_v10  ;;  %v3173_v51 = vld [vmem:[%s3437_s26 + $0x68] sm:$0xff]  ;;  %v2211_v10 = vrot.slane %v3172_v4, 1 }
 0x166   : > { %3136 = vmatmul.msk.f32.gmra.mxu1 %vm352_vm1, %v3865_v24  ;;  %v1526_v34 = vpop.f32.mrf.mxu0  ;;  %v2212_v7 = vrot.slane %v3173_v51, 1  ;;  %v2503_v59 = vrot.slane %v3173_v51, 2 }
 0x167   : > { %v4393_v12 = vadd.f32 %v1523_v13, %v1278_v45  ;;  %3217 = vmatmul.msk.f32.gmra.mxu2 %vm352_vm1, %v3169_v36  ;;  %v1609_v13 = vsel %vm707_vm2, %v3860_v0, %v1608_v43  ;;  %v2502_v45 = vrot.slane %v3172_v4, 2 }
 0x168   : > { %3250 = vmatmul.msk.f32.gmra.mxu3 %vm352_vm1, %v2208_v29  ;;  %v2213_v54 = vsel %vm269_vm0, %v2211_v10, %v2212_v7  ;;  %v3176_v10 = vld [vmem:[%s3437_s26 + $0x80] sm:$0xff] }
 0x169   : > { %3283 = vmatmul.msk.f32.gmra.mxu0 %vm352_vm1, %v2499_v17 }
 0x16a   : > { %v925_v50 = vpop.f32.mrf.mxu2 }
 0x16b   : > { %v1219_v24 = vpop.f32.mrf.mxu3  ;;  %v985_v25 = vadd.f32 %v925_v50, %v666_v3  ;;  %v668_v20 = vpop.f32.mrf.mxu1  ;;  %v2504_v3 = vsel %vm707_vm2, %v2502_v45, %v2503_v59  ;;  %v1613_v50 = vrot.slane %v3874_v46, 2 }
 0x16c   : > { %v669_v0 = vadd.f32 %v668_v20, %v4008_v61  ;;  %v2505_v20 = vrot.slane %v3174_v33, 2 }
 0x16d   : > { %v1279_v36 = vadd.f32 %v1219_v24, %v985_v25  ;;  %v2214_v24 = vrot.slane %v3174_v33, 1 }
 0x16e   : > { %3137 = vmatmul.msk.f32.gmra.mxu1 %vm352_vm1, %v1609_v13  ;;  %v1529_v21 = vpop.f32.mrf.mxu0 }
 0x16f   : > { %v4407_v5 = vadd.f32 %v1526_v34, %v1279_v36  ;;  %3218 = vmatmul.msk.f32.gmra.mxu2 %vm352_vm1, %v3170_v56  ;;  %v1614_v36 = vsel %vm707_vm2, %v3890_v32, %v1613_v50  ;;  %v1618_v50 = vrot.slane %v3904_v26, 2 }
 0x170   : > { %3251 = vmatmul.msk.f32.gmra.mxu3 %vm352_vm1, %v2210_v27 }
 0x171   : > { %3284 = vmatmul.msk.f32.gmra.mxu0 %vm352_vm1, %v2501_v58  ;;  %v3175_v58 = vld [vmem:[%s3437_s26 + $0x78] sm:$0xff] }
 0x172   : > { %v928_v18 = vpop.f32.mrf.mxu2 }
 0x173   : > { %v1222_v29 = vpop.f32.mrf.mxu3  ;;  %v986_v17 = vadd.f32 %v928_v18, %v669_v0  ;;  %v671_v43 = vpop.f32.mrf.mxu1  ;;  %v2216_v18 = vrot.slane %v3175_v58, 1 }
 0x174   : > { %v672_v11 = vadd.f32 %v671_v43, %v4030_v42  ;;  %v2506_v42 = vsel %vm707_vm2, %v2503_v59, %v2505_v20  ;;  %v2508_v43 = vrot.slane %v3176_v10, 2 }
 0x175   : > { %v1280_v34 = vadd.f32 %v1222_v29, %v986_v17  ;;  %v2217_v29 = vrot.slane %v3176_v10, 1  ;;  %v2507_v17 = vrot.slane %v3175_v58, 2 }
 0x176   : > { %3138 = vmatmul.msk.f32.gmra.mxu1 %vm352_vm1, %v3895_v22  ;;  %v1532_v56 = vpop.f32.mrf.mxu0 }
 0x177   : > { %v4418_v61 = vadd.f32 %v1529_v21, %v1280_v34  ;;  %3219 = vmatmul.msk.f32.gmra.mxu2 %vm352_vm1, %v3172_v4  ;;  %v2215_v21 = vsel %vm269_vm0, %v2212_v7, %v2214_v24  ;;  %v2218_v59 = vsel %vm269_vm0, %v2216_v18, %v2217_v29 }
 0x178   : > { %3252 = vmatmul.msk.f32.gmra.mxu3 %vm352_vm1, %v2213_v54 }
 0x179   : > { %3285 = vmatmul.msk.f32.gmra.mxu0 %vm352_vm1, %v2504_v3  ;;  %v2509_v3 = vsel %vm707_vm2, %v2507_v17, %v2508_v43 }
 0x17a   : > { %v931_v25 = vpop.f32.mrf.mxu2 }
 0x17b   : > { %v1225_v22 = vpop.f32.mrf.mxu3  ;;  %v987_v13 = vadd.f32 %v931_v25, %v672_v11  ;;  %v674_v27 = vpop.f32.mrf.mxu1 }
 0x17c   : > { %v675_v32 = vadd.f32 %v674_v27, %v4052_v62  ;;  %v1619_v27 = vsel %vm707_vm2, %v3921_v19, %v1618_v50  ;;  %v4950_v50 = vld [vmem:[#allocation24_spill] sm:$0xff] }
 0x17d   : > { %v1281_v4 = vadd.f32 %v1225_v22, %v987_v13 }
 0x17e   : > { %3139 = vmatmul.msk.f32.gmra.mxu1 %vm352_vm1, %v1614_v36  ;;  %v1535_v46 = vpop.f32.mrf.mxu0 }
 0x17f   : > { %v4432_v0 = vadd.f32 %v1532_v56, %v1281_v4  ;;  %3220 = vmatmul.msk.f32.gmra.mxu2 %vm352_vm1, %v3173_v51  ;;  %v3177_v56 = vld [vmem:[%s3437_s26 + $0x88] sm:$0x3]  ;;  %v3178_v4 = vld [vmem:[%s3437_s26 + $0x90] sm:$0xff] }
 0x180   : > { %3253 = vmatmul.msk.f32.gmra.mxu3 %vm352_vm1, %v2215_v21  ;;  %v2219_v24 = vrot.slane %v3177_v56, 1  ;;  %v2510_v22 = vrot.slane %v3177_v56, 2  ;;  %v3344_v56 = vld [vmem:[%s3437_s26 + $0x88] sm:$0x3] }
 0x181   : > { %3286 = vmatmul.msk.f32.gmra.mxu0 %vm352_vm1, %v2506_v42  ;;  %v2221_v42 = vrot.slane %v3178_v4, 1 }
 0x182   : > { %v934_v7 = vpop.f32.mrf.mxu2  ;;  %v2220_v36 = vsel %vm269_vm0, %v2217_v29, %v2219_v24 }
 0x183   : > { %v1228_v45 = vpop.f32.mrf.mxu3  ;;  %v988_v54 = vadd.f32 %v934_v7, %v675_v32  ;;  %v677_v34 = vpop.f32.mrf.mxu1  ;;  %v2512_v7 = vrot.slane %v3178_v4, 2 }
 0x184   : > { %v678_v11 = vadd.f32 %v677_v34, %v4074_v8  ;;  %v2511_v8 = vsel %vm707_vm2, %v2508_v43, %v2510_v22 }
 0x185   : > { %v1282_v33 = vadd.f32 %v1228_v45, %v988_v54 }
 0x186   : > { %3140 = vmatmul.msk.f32.gmra.mxu1 %vm352_vm1, %v3928_v41  ;;  %v1538_v51 = vpop.f32.mrf.mxu0 }
 0x187   : > { %v4443_v62 = vadd.f32 %v1535_v46, %v1282_v33  ;;  %3221 = vmatmul.msk.f32.gmra.mxu2 %vm352_vm1, %v3175_v58  ;;  %v3179_v58 = vld [vmem:[%s3437_s26 + $0x98] sm:$0xff] }
 0x188   : > { %3254 = vmatmul.msk.f32.gmra.mxu3 %vm352_vm1, %v2218_v59  ;;  %v2222_v18 = vrot.slane %v3179_v58, 1  ;;  %v2513_v45 = vrot.slane %v3179_v58, 2  ;;  %v3180_v59 = vld [vmem:[%s3437_s26 + $0xa0] sm:$0x3] }
 0x189   : > { %3287 = vmatmul.msk.f32.gmra.mxu0 %vm352_vm1, %v2509_v3  ;;  %v2224_v3 = vrot.slane %v3180_v59, 1 }
 0x18a   : > { %v937_v25 = vpop.f32.mrf.mxu2  ;;  %v2223_v54 = vsel %vm269_vm0, %v2221_v42, %v2222_v18  ;;  %v2514_v33 = vsel %vm707_vm2, %v2512_v7, %v2513_v45 }
 0x18b   : > { %v1231_v41 = vpop.f32.mrf.mxu3  ;;  %v989_v20 = vadd.f32 %v937_v25, %v678_v11  ;;  %v680_v13 = vpop.f32.mrf.mxu1  ;;  %v2515_v25 = vrot.slane %v3180_v59, 2 }
 0x18c   : > { %v681_v19 = vadd.f32 %v680_v13, %v4096_v60 }
 0x18d   : > { %v1283_v21 = vadd.f32 %v1231_v41, %v989_v20  ;;  %v4951_v20 = vld [vmem:[#allocation25_spill] sm:$0xff] }
 0x18e   : > { %3141 = vmatmul.msk.f32.gmra.mxu1 %vm352_vm1, %v1619_v27  ;;  %v1541_v26 = vpop.f32.mrf.mxu0  ;;  %v2225_v27 = vsel %vm269_vm0, %v2222_v18, %v2224_v3 }
 0x18f   : > { %v4457_v46 = vadd.f32 %v1538_v51, %v1283_v21  ;;  %3222 = vmatmul.msk.f32.gmra.mxu2 %vm352_vm1, %v3176_v10  ;;  %v1623_v51 = vrot.slane %v3344_v56, 2  ;;  %v3181_v21 = vld [vmem:[%s3437_s26 + $0xa8] sm:$0xff] }
 0x190   : > { %3255 = vmatmul.msk.f32.gmra.mxu3 %vm352_vm1, %v2220_v36 }
 0x191   : > { %3288 = vmatmul.msk.f32.gmra.mxu0 %vm352_vm1, %v2511_v8  ;;  %v1624_v13 = vsel %vm707_vm2, %v4951_v20, %v1623_v51  ;;  %v2516_v8 = vsel %vm707_vm2, %v2513_v45, %v2515_v25 }
 0x192   : > { %v940_v29 = vpop.f32.mrf.mxu2 }
 0x193   : > { %v1234_v32 = vpop.f32.mrf.mxu3  ;;  %v990_v17 = vadd.f32 %v940_v29, %v681_v19  ;;  %v683_v43 = vpop.f32.mrf.mxu1  ;;  %v2226_v19 = vrot.slane %v3181_v21, 1 }
 0x194   : > { %v684_v24 = vadd.f32 %v683_v43, %v4950_v50  ;;  %v2517_v43 = vrot.slane %v3181_v21, 2  ;;  %v3345_v50 = vld [vmem:[%s3437_s26 + $0xa0] sm:$0x3] }
 0x195   : > { %v1284_v34 = vadd.f32 %v1234_v32, %v990_v17  ;;  %v4952_v32 = vld [vmem:[#allocation26_spill] sm:$0xff] }
 0x196   : > { %3142 = vmatmul.msk.f32.gmra.mxu1 %vm352_vm1, %v3972_v44  ;;  %v1544_v10 = vpop.f32.mrf.mxu0 }
 0x197   : > { %v4468_v60 = vadd.f32 %v1541_v26, %v1284_v34  ;;  %3223 = vmatmul.msk.f32.gmra.mxu2 %vm352_vm1, %v3178_v4  ;;  %v3182_v4 = vld [vmem:[%s3437_s26 + $0xb0] sm:$0xff] }
 0x198   : > { %3256 = vmatmul.msk.f32.gmra.mxu3 %vm352_vm1, %v2223_v54  ;;  %v2227_v29 = vrot.slane %v3182_v4, 1  ;;  %v2518_v54 = vrot.slane %v3182_v4, 2 }
 0x199   : > { %3289 = vmatmul.msk.f32.gmra.mxu0 %vm352_vm1, %v2514_v33  ;;  %v3183_v33 = vld [vmem:[%s3437_s26 + $0xb8] sm:$0x3] }
 0x19a   : > { %v943_v11 = vpop.f32.mrf.mxu2  ;;  %v2228_v59 = vsel %vm269_vm0, %v2226_v19, %v2227_v29  ;;  %v2519_v51 = vsel %vm707_vm2, %v2517_v43, %v2518_v54  ;;  %v2520_v20 = vrot.slane %v3183_v33, 2  ;;  %v3184_v19 = vld [vmem:[%s3437_s26 + $0xc0] sm:$0xff] }
 0x19b   : > { %v1237_v44 = vpop.f32.mrf.mxu3  ;;  %v991_v41 = vadd.f32 %v943_v11, %v684_v24  ;;  %v686_v22 = vpop.f32.mrf.mxu1  ;;  %v1628_v24 = vrot.slane %v3345_v50, 2  ;;  %v2229_v11 = vrot.slane %v3183_v33, 1  ;;  %v2231_v43 = vrot.slane %v3184_v19, 1 }
 0x19c   : > { %v687_v7 = vadd.f32 %v686_v22, %v4952_v32  ;;  %v3185_v32 = vld [vmem:[%s3437_s26 + $0xc8] sm:$0xff]  ;;  %v2522_v33 = vrot.slane %v3184_v19, 2 }
 0x19d   : > { %v1285_v36 = vadd.f32 %v1237_v44, %v991_v41  ;;  %v4954_v44 = vld [vmem:[#allocation27_spill] sm:$0xff] }
 0x19e   : > { %3143 = vmatmul.msk.f32.gmra.mxu1 %vm352_vm1, %v1624_v13  ;;  %v1547_v26 = vpop.f32.mrf.mxu0 }
 0x19f   : > { %v4482_v42 = vadd.f32 %v1544_v10, %v1285_v36  ;;  %3224 = vmatmul.msk.f32.gmra.mxu2 %vm352_vm1, %v3179_v58  ;;  %v4953_v58 = vld [vmem:[#allocation30_spill] sm:$0xff]  ;;  %v4955_v36 = vld [vmem:[#allocation28_spill] sm:$0xff] }
 0x1a0   : > { %3257 = vmatmul.msk.f32.gmra.mxu3 %vm352_vm1, %v2225_v27 }
 0x1a1   : > { %3290 = vmatmul.msk.f32.gmra.mxu0 %vm352_vm1, %v2516_v8 }
 0x1a2   : > { %v946_v18 = vpop.f32.mrf.mxu2 }
 0x1a3   : > { %v1240_v17 = vpop.f32.mrf.mxu3  ;;  %v992_v34 = vadd.f32 %v946_v18, %v687_v7  ;;  %v689_v45 = vpop.f32.mrf.mxu1  ;;  %v2521_v18 = vsel %vm707_vm2, %v2518_v54, %v2520_v20 }
 0x1a4   : > { %v690_v25 = vadd.f32 %v689_v45, %v4954_v44  ;;  %v4956_v45 = vld [vmem:[#allocation29_spill] sm:$0xff] }
 0x1a5   : > { %v1286_v10 = vadd.f32 %v1240_v17, %v992_v34  ;;  %v2232_v34 = vrot.slane %v3185_v32, 1 }
 0x1a6   : > { %3144 = vmatmul.msk.f32.gmra.mxu1 %vm352_vm1, %v4953_v58  ;;  %v1550_v56 = vpop.f32.mrf.mxu0  ;;  %v2523_v58 = vrot.slane %v3185_v32, 2 }
 0x1a7   : > { %v4493_v3 = vadd.f32 %v1547_v26, %v1286_v10  ;;  %3225 = vmatmul.msk.f32.gmra.mxu2 %vm352_vm1, %v3181_v21  ;;  %v1629_v26 = vsel %vm707_vm2, %v4955_v36, %v1628_v24  ;;  %v2230_v21 = vsel %vm269_vm0, %v2227_v29, %v2229_v11  ;;  %v3186_v24 = vld [vmem:[%s3437_s26 + $0xd0] sm:$0x3] }
 0x1a8   : > { %3258 = vmatmul.msk.f32.gmra.mxu3 %vm352_vm1, %v2228_v59  ;;  %v2524_v44 = vsel %vm707_vm2, %v2522_v33, %v2523_v58  ;;  %v2234_v20 = vrot.slane %v3186_v24, 1 }
 0x1a9   : > { %3291 = vmatmul.msk.f32.gmra.mxu0 %vm352_vm1, %v2519_v51 }
 0x1aa   : > { %v949_v41 = vpop.f32.mrf.mxu2 }
 0x1ab   : > { %v1243_v22 = vpop.f32.mrf.mxu3  ;;  %v993_v13 = vadd.f32 %v949_v41, %v690_v25  ;;  %v692_v27 = vpop.f32.mrf.mxu1  ;;  %v3346_v41 = vld [vmem:[%s3437_s26 + $0xb8] sm:$0x3] }
 0x1ac   : > { %v693_v59 = vadd.f32 %v692_v27, %v4956_v45 }
 0x1ad   : > { %v1287_v8 = vadd.f32 %v1243_v22, %v993_v13  ;;  %v1633_v22 = vrot.slane %v3346_v41, 2  ;;  %v4958_v13 = vld [vmem:[#allocation31_spill] sm:$0xff] }
 0x1ae   : > { %3145 = vmatmul.msk.f32.gmra.mxu1 %vm352_vm1, %v1629_v26  ;;  %v1553_v7 = vpop.f32.mrf.mxu0 }
 0x1af   : > { %v4507_v17 = vadd.f32 %v1550_v56, %v1287_v8  ;;  %3226 = vmatmul.msk.f32.gmra.mxu2 %vm352_vm1, %v3182_v4  ;;  %v2233_v56 = vsel %vm269_vm0, %v2231_v43, %v2232_v34  ;;  %v4957_v4 = vld [vmem:[#allocation34_spill] sm:$0xff] }
 0x1b0   : > { %3259 = vmatmul.msk.f32.gmra.mxu3 %vm352_vm1, %v2230_v21  ;;  %v2525_v21 = vrot.slane %v3186_v24, 2 }
 0x1b1   : > { %3292 = vmatmul.msk.f32.gmra.mxu0 %vm352_vm1, %v2521_v18 }
 0x1b2   : > { %v952_v29 = vpop.f32.mrf.mxu2  ;;  %v2526_v33 = vsel %vm707_vm2, %v2523_v58, %v2525_v21  ;;  %v3347_v21 = vld [vmem:[%s3437_s26 + $0xd0] sm:$0x3] }
 0x1b3   : > { %v1246_v10 = vpop.f32.mrf.mxu3  ;;  %v994_v51 = vadd.f32 %v952_v29, %v693_v59  ;;  %v695_v54 = vpop.f32.mrf.mxu1  ;;  %v3187_v59 = vld [vmem:[%s3437_s26 + $0xd8] sm:$0xff]  ;;  %v3188_v29 = vld [vmem:[%s3437_s26 + $0xe0] sm:$0xff] }
 0x1b4   : > { %v696_v27 = vadd.f32 %v695_v54, %v4958_v13  ;;  %v2236_v54 = vrot.slane %v3187_v59, 1  ;;  %v2528_v41 = vrot.slane %v3188_v29, 2  ;;  %v3189_v13 = vld [vmem:[%s3437_s26 + $0xe8] sm:$0x3] }
 0x1b5   : > { %v1288_v50 = vadd.f32 %v1246_v10, %v994_v51 }
 0x1b6   : > { %3146 = vmatmul.msk.f32.gmra.mxu1 %vm352_vm1, %v4957_v4  ;;  %v1556_v11 = vpop.f32.mrf.mxu0 }
 0x1b7   : > { %v4518_v25 = vadd.f32 %v1553_v7, %v1288_v50  ;;  %3227 = vmatmul.msk.f32.gmra.mxu2 %vm352_vm1, %v3184_v19  ;;  %v4959_v7 = vld [vmem:[#allocation32_spill] sm:$0xff]  ;;  %v2235_v19 = vsel %vm269_vm0, %v2232_v34, %v2234_v20  ;;  %v4960_v50 = vld [vmem:[#allocation33_spill] sm:$0xff] }
 0x1b8   : > { %3260 = vmatmul.msk.f32.gmra.mxu3 %vm352_vm1, %v2233_v56  ;;  %v1634_v43 = vsel %vm707_vm2, %v4959_v7, %v1633_v22  ;;  %v2237_v56 = vrot.slane %v3188_v29, 1  ;;  %v4962_v7 = vld [vmem:[#allocation35_spill] sm:$0xff] }
 0x1b9   : > { %3293 = vmatmul.msk.f32.gmra.mxu0 %vm352_vm1, %v2524_v44  ;;  %v2527_v44 = vrot.slane %v3187_v59, 2 }
 0x1ba   : > { %v955_v36 = vpop.f32.mrf.mxu2 }
 0x1bb   : > { %v1249_v26 = vpop.f32.mrf.mxu3  ;;  %v995_v8 = vadd.f32 %v955_v36, %v696_v27  ;;  %v698_v18 = vpop.f32.mrf.mxu1  ;;  %v2529_v36 = vsel %vm707_vm2, %v2527_v44, %v2528_v41 }
 0x1bc   : > { %v699_v24 = vadd.f32 %v698_v18, %v4960_v50  ;;  %v2239_v18 = vrot.slane %v3189_v13, 1 }
 0x1bd   : > { %v1289_v45 = vadd.f32 %v1249_v26, %v995_v8  ;;  %v1638_v8 = vrot.slane %v3347_v21, 2 }
 0x1be   : > { %3147 = vmatmul.msk.f32.gmra.mxu1 %vm352_vm1, %v1634_v43  ;;  %v1559_v10 = vpop.f32.mrf.mxu0 }
 0x1bf   : > { %v4532_v51 = vadd.f32 %v1556_v11, %v1289_v45  ;;  %3228 = vmatmul.msk.f32.gmra.mxu2 %vm352_vm1, %v3185_v32  ;;  %v2238_v11 = vsel %vm269_vm0, %v2236_v54, %v2237_v56  ;;  %v4961_v32 = vld [vmem:[#allocation37_spill] sm:$0xff] }
 0x1c0   : > { %3261 = vmatmul.msk.f32.gmra.mxu3 %vm352_vm1, %v2235_v19 }
 0x1c1   : > { %3294 = vmatmul.msk.f32.gmra.mxu0 %vm352_vm1, %v2526_v33  ;;  %v2530_v33 = vrot.slane %v3189_v13, 2 }
 0x1c2   : > { %v958_v34 = vpop.f32.mrf.mxu2 }
 0x1c3   : > { %v1252_v4 = vpop.f32.mrf.mxu3  ;;  %v996_v22 = vadd.f32 %v958_v34, %v699_v24  ;;  %v701_v58 = vpop.f32.mrf.mxu1  ;;  %v3190_v34 = vld [vmem:[%s3437_s26 + $0xf0] sm:$0xff] }
 0x1c4   : > { %v702_v43 = vadd.f32 %v701_v58, %v4962_v7  ;;  %v3192_v7 = vld [vmem:[%s3437_s26 + $0x100] sm:$0x3] }
 0x1c5   : > { %v1290_v20 = vadd.f32 %v1252_v4, %v996_v22  ;;  %v3191_v4 = vld [vmem:[%s3437_s26 + $0xf8] sm:$0xff]  ;;  %v2531_v22 = vsel %vm707_vm2, %v2528_v41, %v2530_v33 }
 0x1c6   : > { %3148 = vmatmul.msk.f32.gmra.mxu1 %vm352_vm1, %v4961_v32  ;;  %v1562_v27 = vpop.f32.mrf.mxu0  ;;  %v2533_v21 = vrot.slane %v3191_v4, 2 }
 0x1c7   : > { %v4543_v26 = vadd.f32 %v1559_v10, %v1290_v20  ;;  %3229 = vmatmul.msk.f32.gmra.mxu2 %vm352_vm1, %v3187_v59  ;;  %v1639_v10 = vsel %vm707_vm2, %v4093_v47, %v1638_v8  ;;  %v2240_v59 = vsel %vm269_vm0, %v2237_v56, %v2239_v18  ;;  %v2242_v20 = vrot.slane %v3191_v4, 1  ;;  %v4963_v47 = vld [vmem:[#allocation36_spill] sm:$0xff] }
 0x1c8   : > { %3262 = vmatmul.msk.f32.gmra.mxu3 %vm352_vm1, %v2238_v11  ;;  %v2241_v11 = vrot.slane %v3190_v34, 1 }
 0x1c9   : > { %3295 = vmatmul.msk.f32.gmra.mxu0 %vm352_vm1, %v2529_v36  ;;  %v2532_v36 = vrot.slane %v3190_v34, 2 }
 0x1ca   : > { %v961_v19 = vpop.f32.mrf.mxu2 }
 0x1cb   : > { %v1255_v45 = vpop.f32.mrf.mxu3  ;;  %v997_v54 = vadd.f32 %v961_v19, %v702_v43  ;;  %v704_v50 = vpop.f32.mrf.mxu1  ;;  %v2534_v43 = vsel %vm707_vm2, %v2532_v36, %v2533_v21 }
 0x1cc   : > { %v705_v13 = vadd.f32 %v704_v50, %v4963_v47  ;;  %v3193_v47 = vld [vmem:[%s3437_s26 + $0x108] sm:$0xff] }
 0x1cd   : > { %v1291_v24 = vadd.f32 %v1255_v45, %v997_v54  ;;  %v3348_v45 = vld [vmem:[%s3437_s26 + $0xe8] sm:$0x3]  ;;  %v2244_v54 = vrot.slane %v3192_v7, 1 }
 0x1ce   : > { %3149 = vmatmul.msk.f32.gmra.mxu1 %vm352_vm1, %v1639_v10  ;;  %v1565_v44 = vpop.f32.mrf.mxu0  ;;  %v1643_v33 = vrot.slane %v3348_v45, 2 }
 0x1cf   : > { %v4557_v58 = vadd.f32 %v1562_v27, %v1291_v24  ;;  %3230 = vmatmul.msk.f32.gmra.mxu2 %vm352_vm1, %v3188_v29  ;;  %v2243_v27 = vsel %vm269_vm0, %v2241_v11, %v2242_v20 }
 0x1d0   : > { %3263 = vmatmul.msk.f32.gmra.mxu3 %vm352_vm1, %v2240_v59  ;;  %v2535_v59 = vrot.slane %v3192_v7, 2 }
 0x1d1   : > { %3296 = vmatmul.msk.f32.gmra.mxu0 %vm352_vm1, %v2531_v22 }
 0x1d2   : > { %v964_v56 = vpop.f32.mrf.mxu2 }
 0x1d3   : > { %v1258_v32 = vpop.f32.mrf.mxu3  ;;  %v998_v8 = vadd.f32 %v964_v56, %v705_v13  ;;  %v1763_v41 = vpop.f32.mrf.mxu1  ;;  %v3194_v13 = vld [vmem:[%s3437_s26 + $0x110] sm:$0xff]  ;;  %v2536_v56 = vsel %vm707_vm2, %v2533_v21, %v2535_v59 }
 0x1d4   : > { %v1859_v50 = vadd.f32 %v1763_v41, %v4121_v9 }
 0x1d5   : > { %v1292_v18 = vadd.f32 %v1258_v32, %v998_v8 }
 0x1d6   : > { %3150 = vmatmul.msk.f32.gmra.mxu1 %vm352_vm1, %v4134_v55  ;;  %v2655_v29 = vpop.f32.mrf.mxu0 }
 0x1d7   : > { %v4568_v19 = vadd.f32 %v1565_v44, %v1292_v18  ;;  %3231 = vmatmul.msk.f32.gmra.mxu2 %vm352_vm1, %v3190_v34  ;;  %v1644_v34 = vsel %vm707_vm2, %v4128_v40, %v1643_v33  ;;  %v2245_v44 = vsel %vm269_vm0, %v2242_v20, %v2244_v54  ;;  %v2246_v40 = vrot.slane %v3193_v47, 1  ;;  %v3349_v54 = vld [vmem:[%s3437_s26 + $0x100] sm:$0x3] }
 0x1d8   : > { %3264 = vmatmul.msk.f32.gmra.mxu3 %vm352_vm1, %v2243_v27  ;;  %v2247_v20 = vrot.slane %v3194_v13, 1  ;;  %v2537_v27 = vrot.slane %v3193_v47, 2  ;;  %v2538_v18 = vrot.slane %v3194_v13, 2 }
 0x1d9   : > { %3297 = vmatmul.msk.f32.gmra.mxu0 %vm352_vm1, %v2534_v43  ;;  %v3195_v43 = vld [vmem:[%s3437_s26 + $0x118] sm:$0x3] }
 0x1da   : > { %v2057_v55 = vpop.f32.mrf.mxu2  ;;  %v2539_v45 = vsel %vm707_vm2, %v2537_v27, %v2538_v18 }
 0x1db   : > { %v2364_v10 = vpop.f32.mrf.mxu3  ;;  %v2153_v24 = vadd.f32 %v2057_v55, %v1859_v50  ;;  %v1766_v22 = vpop.f32.mrf.mxu1  ;;  %v1648_v50 = vrot.slane %v3349_v54, 2  ;;  %v2249_v55 = vrot.slane %v3195_v43, 1 }
 0x1dc   : > { %v1860_v36 = vadd.f32 %v1766_v22, %v4138_v35 }
 0x1dd   : > { %v2460_v11 = vadd.f32 %v2364_v10, %v2153_v24  ;;  %v2540_v24 = vrot.slane %v3195_v43, 2 }
 0x1de   : > { %3151 = vmatmul.msk.f32.gmra.mxu1 %vm352_vm1, %v1644_v34  ;;  %v2658_v9 = vpop.f32.mrf.mxu0 }
 0x1df   : > { %v2751_v32 = vadd.f32 %v2655_v29, %v2460_v11  ;;  %3232 = vmatmul.msk.f32.gmra.mxu2 %vm352_vm1, %v3191_v4  ;;  %v2248_v4 = vsel %vm269_vm0, %v2246_v40, %v2247_v20  ;;  %v2250_v11 = vsel %vm269_vm0, %v2247_v20, %v2249_v55 }
 0x1e0   : > { %3265 = vmatmul.msk.f32.gmra.mxu3 %vm352_vm1, %v2245_v44  ;;  %v1649_v44 = vsel %vm707_vm2, %v4162_v31, %v1648_v50 }
 0x1e1   : > { %2784 = vst.msk [vmem:[%s4584_s14] sm:$0xff] %vm2783_vm3, %v2751_v32  ;;  %3298 = vmatmul.msk.f32.gmra.mxu0 %vm352_vm1, %v2536_v56  ;;  %v3197_v56 = vld [vmem:[%s3437_s26 + $0x128] sm:$0xff]  ;;  %v2541_v32 = vsel %vm707_vm2, %v2538_v18, %v2540_v24 }
 0x1e2   : > { %v2060_v8 = vpop.f32.mrf.mxu2 }
 0x1e3   : > { %v2367_v41 = vpop.f32.mrf.mxu3  ;;  %v2154_v21 = vadd.f32 %v2060_v8, %v1860_v36  ;;  %v1769_v7 = vpop.f32.mrf.mxu1  ;;  %v2252_v8 = vrot.slane %v3197_v56, 1 }
 0x1e4   : > { %v1861_v10 = vadd.f32 %v1769_v7, %v4155_v1 }
 0x1e5   : > { %v2461_v29 = vadd.f32 %v2367_v41, %v2154_v21  ;;  %v2543_v21 = vrot.slane %v3197_v56, 2 }
 0x1e6   : > { %3152 = vmatmul.msk.f32.gmra.mxu1 %vm352_vm1, %v4168_v14  ;;  %v2661_v35 = vpop.f32.mrf.mxu0 }
 0x1e7   : > { %v2752_v33 = vadd.f32 %v2658_v9, %v2461_v29  ;;  %3233 = vmatmul.msk.f32.gmra.mxu2 %vm352_vm1, %v3193_v47  ;;  %v3196_v9 = vld [vmem:[%s3437_s26 + $0x120] sm:$0xff]  ;;  %v3198_v29 = vld [vmem:[%s3437_s26 + $0x130] sm:$0x3] }
 0x1e8   : > { %3266 = vmatmul.msk.f32.gmra.mxu3 %vm352_vm1, %v2248_v4  ;;  %v2251_v36 = vrot.slane %v3196_v9, 1  ;;  %v2542_v27 = vrot.slane %v3196_v9, 2  ;;  %v2254_v54 = vrot.slane %v3198_v29, 1 }
 0x1e9   : > { %2785 = vst.msk [vmem:[%s4584_s14 + $0x8] sm:$0xff] %vm2783_vm3, %v2752_v33  ;;  %3299 = vmatmul.msk.f32.gmra.mxu0 %vm352_vm1, %v2539_v45  ;;  %v3350_v45 = vld [vmem:[%s3437_s26 + $0x118] sm:$0x3] }
 0x1ea   : > { %v2063_v14 = vpop.f32.mrf.mxu2  ;;  %v2544_v43 = vsel %vm707_vm2, %v2542_v27, %v2543_v21  ;;  %v1653_v33 = vrot.slane %v3350_v45, 2  ;;  %v3352_v45 = vld [vmem:[%s3437_s26 + $0x130] sm:$0x3] }
 0x1eb   : > { %v2370_v59 = vpop.f32.mrf.mxu3  ;;  %v2155_v22 = vadd.f32 %v2063_v14, %v1861_v10  ;;  %v1772_v34 = vpop.f32.mrf.mxu1  ;;  %v2545_v10 = vrot.slane %v3198_v29, 2  ;;  %v3201_v29 = vld [vmem:[%s3437_s26 + $0x148] sm:$0x3] }
 0x1ec   : > { %v1862_v31 = vadd.f32 %v1772_v34, %v4172_v15  ;;  %v1654_v24 = vsel %vm707_vm2, %v4197_v23, %v1653_v33  ;;  %v2259_v33 = vrot.slane %v3201_v29, 1 }
 0x1ed   : > { %v2462_v47 = vadd.f32 %v2370_v59, %v2155_v22  ;;  %v2255_v22 = vsel %vm269_vm0, %v2252_v8, %v2254_v54 }
 0x1ee   : > { %3153 = vmatmul.msk.f32.gmra.mxu1 %vm352_vm1, %v1649_v44  ;;  %v2664_v1 = vpop.f32.mrf.mxu0  ;;  %v3199_v44 = vld [vmem:[%s3437_s26 + $0x138] sm:$0xff] }
 0x1ef   : > { %v2753_v40 = vadd.f32 %v2661_v35, %v2462_v47  ;;  %3234 = vmatmul.msk.f32.gmra.mxu2 %vm352_vm1, %v3194_v13  ;;  %v2253_v13 = vsel %vm269_vm0, %v2251_v36, %v2252_v8  ;;  %v2546_v47 = vsel %vm707_vm2, %v2543_v21, %v2545_v10  ;;  %v2256_v23 = vrot.slane %v3199_v44, 1  ;;  %v4964_v36 = vld [vmem:[#allocation16_spill] sm:$0xff] }
 0x1f0   : > { %3267 = vmatmul.msk.f32.gmra.mxu3 %vm352_vm1, %v2250_v11  ;;  %v3200_v11 = vld [vmem:[%s3437_s26 + $0x140] sm:$0xff] }
 0x1f1   : > { %2786 = vst.msk [vmem:[%s4584_s14 + $0x10] sm:$0xff] %vm2783_vm3, %v2753_v40  ;;  %3300 = vmatmul.msk.f32.gmra.mxu0 %vm352_vm1, %v2541_v32  ;;  %v2257_v40 = vrot.slane %v3200_v11, 1  ;;  %v2548_v27 = vrot.slane %v3200_v11, 2 }
 0x1f2   : > { %v2066_v20 = vpop.f32.mrf.mxu2 }
 0x1f3   : > { %v2373_v41 = vpop.f32.mrf.mxu3  ;;  %v2156_v18 = vadd.f32 %v2066_v20, %v1862_v31  ;;  %v1775_v7 = vpop.f32.mrf.mxu1 }
 0x1f4   : > { %v1863_v50 = vadd.f32 %v1775_v7, %v4189_v53 }
 0x1f5   : > { %v2463_v4 = vadd.f32 %v2373_v41, %v2156_v18  ;;  %v2547_v41 = vrot.slane %v3199_v44, 2 }
 0x1f6   : > { %3154 = vmatmul.msk.f32.gmra.mxu1 %vm352_vm1, %v4203_v2  ;;  %v2667_v15 = vpop.f32.mrf.mxu0 }
 0x1f7   : > { %v2754_v35 = vadd.f32 %v2664_v1, %v2463_v4  ;;  %3235 = vmatmul.msk.f32.gmra.mxu2 %vm352_vm1, %v3196_v9  ;;  %v3351_v9 = vld [vmem:[%s3437_s26 + $0x128] sm:$0xff] }
 0x1f8   : > { %3268 = vmatmul.msk.f32.gmra.mxu3 %vm352_vm1, %v2253_v13  ;;  %v1656_v1 = vrot.slane %v3351_v9, 2  ;;  %v2258_v13 = vsel %vm269_vm0, %v2256_v23, %v2257_v40  ;;  %v4966_v23 = vld [vmem:[#allocation14_spill] sm:$0xff] }
 0x1f9   : > { %2787 = vst.msk [vmem:[%s4584_s14 + $0x18] sm:$0xff] %vm2783_vm3, %v2754_v35  ;;  %3301 = vmatmul.msk.f32.gmra.mxu0 %vm352_vm1, %v2544_v43  ;;  %v2549_v43 = vsel %vm707_vm2, %v2547_v41, %v2548_v27 }
 0x1fa   : > { %v2069_v2 = vpop.f32.mrf.mxu2 }
 0x1fb   : > { %v2376_v55 = vpop.f32.mrf.mxu3  ;;  %v2157_v14 = vadd.f32 %v2069_v2, %v1863_v50  ;;  %v1778_v59 = vpop.f32.mrf.mxu1 }
 0x1fc   : > { %v1864_v8 = vadd.f32 %v1778_v59, %v4964_v36 }
 0x1fd   : > { %v2464_v34 = vadd.f32 %v2376_v55, %v2157_v14  ;;  %v2550_v55 = vrot.slane %v3201_v29, 2 }
 0x1fe   : > { %3155 = vmatmul.msk.f32.gmra.mxu1 %vm352_vm1, %v1654_v24  ;;  %v2670_v53 = vpop.f32.mrf.mxu0  ;;  %v2260_v24 = vsel %vm269_vm0, %v2257_v40, %v2259_v33 }
 0x1ff   : > { %v2755_v32 = vadd.f32 %v2667_v15, %v2464_v34  ;;  %3236 = vmatmul.msk.f32.gmra.mxu2 %vm352_vm1, %v3197_v56  ;;  %v4965_v56 = vrot.slane %v4924_v6, 2  ;;  %v1658_v6 = vrot.slane %v3352_v45, 2  ;;  %v3202_v34 = vld [vmem:[%s3437_s26 + $0x150] sm:$0xff] }
 0x200   : > { %3269 = vmatmul.msk.f32.gmra.mxu3 %vm352_vm1, %v2255_v22  ;;  %v2261_v9 = vrot.slane %v3202_v34, 1 }
 0x201   : > { %2788 = vst.msk [vmem:[%s4584_s14 + $0x20] sm:$0xff] %vm2783_vm3, %v2755_v32  ;;  %3302 = vmatmul.msk.f32.gmra.mxu0 %vm352_vm1, %v2546_v47  ;;  %v1657_v7 = vsel %vm707_vm2, %v4965_v56, %v1656_v1  ;;  %v1659_v59 = vsel %vm707_vm2, %v1656_v1, %v1658_v6 }
 0x202   : > { %v2072_v31 = vpop.f32.mrf.mxu2 }
 0x203   : > { %v2379_v20 = vpop.f32.mrf.mxu3  ;;  %v2158_v21 = vadd.f32 %v2072_v31, %v1864_v8  ;;  %v1781_v18 = vpop.f32.mrf.mxu1  ;;  %v2552_v8 = vrot.slane %v3202_v34, 2 }
 0x204   : > { %v1865_v54 = vadd.f32 %v1781_v18, %v4225_v48 }
 0x205   : > { %v2465_v4 = vadd.f32 %v2379_v20, %v2158_v21  ;;  %v3204_v21 = vld [vmem:[%s3437_s26 + $0x160] sm:$0x3] }
 0x206   : > { %3156 = vmatmul.msk.f32.gmra.mxu1 %vm352_vm1, %v1657_v7  ;;  %v2673_v15 = vpop.f32.mrf.mxu0  ;;  %v2264_v29 = vrot.slane %v3204_v21, 1 }
 0x207   : > { %v2756_v35 = vadd.f32 %v2670_v53, %v2465_v4  ;;  %3237 = vmatmul.msk.f32.gmra.mxu2 %vm352_vm1, %v3199_v44  ;;  %v3203_v44 = vld [vmem:[%s3437_s26 + $0x158] sm:$0xff]  ;;  %v2551_v53 = vsel %vm707_vm2, %v2548_v27, %v2550_v55 }
 0x208   : > { %3270 = vmatmul.msk.f32.gmra.mxu3 %vm352_vm1, %v2258_v13  ;;  %v2262_v32 = vrot.slane %v3203_v44, 1  ;;  %v2553_v31 = vrot.slane %v3203_v44, 2  ;;  %v3353_v13 = vld [vmem:[%s3437_s26 + $0x148] sm:$0x3] }
 0x209   : > { %2789 = vst.msk [vmem:[%s4584_s14 + $0x28] sm:$0xff] %vm2783_vm3, %v2756_v35  ;;  %3303 = vmatmul.msk.f32.gmra.mxu0 %vm352_vm1, %v2549_v43  ;;  %v1663_v4 = vrot.slane %v3353_v13, 2  ;;  %v2555_v35 = vrot.slane %v3204_v21, 2 }
 0x20a   : > { %v2075_v50 = vpop.f32.mrf.mxu2  ;;  %v2554_v56 = vsel %vm707_vm2, %v2552_v8, %v2553_v31 }
 0x20b   : > { %v2382_v2 = vpop.f32.mrf.mxu3  ;;  %v2159_v10 = vadd.f32 %v2075_v50, %v1865_v54  ;;  %v1784_v14 = vpop.f32.mrf.mxu1  ;;  %v1664_v33 = vsel %vm707_vm2, %v4260_v37, %v1663_v4  ;;  %v2265_v54 = vsel %vm269_vm0, %v2262_v32, %v2264_v29  ;;  %v4967_v29 = vld [vmem:[#allocation20_spill] sm:$0xff] }
 0x20c   : > { %v1866_v1 = vadd.f32 %v1784_v14, %v4966_v23 }
 0x20d   : > { %v2466_v22 = vadd.f32 %v2382_v2, %v2159_v10  ;;  %v3205_v2 = vld [vmem:[%s3437_s26 + $0x168] sm:$0xff]  ;;  %v2556_v10 = vsel %vm707_vm2, %v2553_v31, %v2555_v35  ;;  %v3208_v35 = vld [vmem:[%s3437_s26 + $0x180] sm:$0xff] }
 0x20e   : > { %3157 = vmatmul.msk.f32.gmra.mxu1 %vm352_vm1, %v1659_v59  ;;  %v2676_v48 = vpop.f32.mrf.mxu0  ;;  %v2266_v59 = vrot.slane %v3205_v2, 1 }
 0x20f   : > { %v2757_v47 = vadd.f32 %v2673_v15, %v2466_v22  ;;  %3238 = vmatmul.msk.f32.gmra.mxu2 %vm352_vm1, %v3200_v11  ;;  %v2263_v11 = vsel %vm269_vm0, %v2261_v9, %v2262_v32  ;;  %v3354_v22 = vld [vmem:[%s3437_s26 + $0x180] sm:$0xff]  ;;  %v2557_v9 = vrot.slane %v3205_v2, 2 }
 0x210   : > { %3271 = vmatmul.msk.f32.gmra.mxu3 %vm352_vm1, %v2260_v24 }
 0x211   : > { %2790 = vst.msk [vmem:[%s4584_s14 + $0x30] sm:$0xff] %vm2783_vm3, %v2757_v47  ;;  %3304 = vmatmul.msk.f32.gmra.mxu0 %vm352_vm1, %v2551_v53 }
 0x212   : > { %v2078_v40 = vpop.f32.mrf.mxu2 }
 0x213   : > { %v2385_v36 = vpop.f32.mrf.mxu3  ;;  %v2160_v20 = vadd.f32 %v2078_v40, %v1866_v1  ;;  %v1787_v41 = vpop.f32.mrf.mxu1 }
 0x214   : > { %v1867_v15 = vadd.f32 %v1787_v41, %v4253_v16  ;;  %v3206_v16 = vld [vmem:[%s3437_s26 + $0x170] sm:$0xff] }
 0x215   : > { %v2467_v27 = vadd.f32 %v2385_v36, %v2160_v20  ;;  %v2267_v24 = vrot.slane %v3206_v16, 1  ;;  %v2558_v32 = vrot.slane %v3206_v16, 2  ;;  %v3207_v36 = vld [vmem:[%s3437_s26 + $0x178] sm:$0x3] }
 0x216   : > { %3158 = vmatmul.msk.f32.gmra.mxu1 %vm352_vm1, %v4266_v38  ;;  %v2679_v18 = vpop.f32.mrf.mxu0  ;;  %v2269_v21 = vrot.slane %v3207_v36, 1 }
 0x217   : > { %v2758_v7 = vadd.f32 %v2676_v48, %v2467_v27  ;;  %3239 = vmatmul.msk.f32.gmra.mxu2 %vm352_vm1, %v3202_v34  ;;  %v1675_v34 = vrot.slane %v3354_v22, 2  ;;  %v4698_v48 = vld [vmem:[%s3437_s26 + $0x188] sm:$0xff]  ;;  %v2559_v31 = vsel %vm707_vm2, %v2557_v9, %v2558_v32 }
 0x218   : > { %3272 = vmatmul.msk.f32.gmra.mxu3 %vm352_vm1, %v2263_v11  ;;  %v1676_v53 = vrot.slane %v4698_v48, 2  ;;  %v3356_v11 = vld [vmem:[%s3437_s26 + $0x160] sm:$0x3] }
 0x219   : > { %2791 = vst.msk [vmem:[%s4584_s14 + $0x38] sm:$0xff] %vm2783_vm3, %v2758_v7  ;;  %3305 = vmatmul.msk.f32.gmra.mxu0 %vm352_vm1, %v2554_v56  ;;  %v1668_v27 = vrot.slane %v3356_v11, 2  ;;  %v2560_v7 = vrot.slane %v3207_v36, 2  ;;  %v4970_v36 = vld [vmem:[#allocation2_spill] sm:$0xff] }
 0x21a   : > { %v2081_v38 = vpop.f32.mrf.mxu2  ;;  %v4709_v20 = vsel %vm707_vm2, %v1675_v34, %v1676_v53 }
 0x21b   : > { %v2388_v43 = vpop.f32.mrf.mxu3  ;;  %v2161_v45 = vadd.f32 %v2081_v38, %v1867_v15  ;;  %v1790_v6 = vpop.f32.mrf.mxu1  ;;  %v1669_v15 = vsel %vm707_vm2, %v4967_v29, %v1668_v27  ;;  %v2270_v38 = vsel %vm269_vm0, %v2267_v24, %v2269_v21 }
 0x21c   : > { %v1868_v37 = vadd.f32 %v1790_v6, %v4270_v49  ;;  %v2268_v49 = vsel %vm269_vm0, %v2266_v59, %v2267_v24  ;;  %v2561_v6 = vsel %vm707_vm2, %v2558_v32, %v2560_v7  ;;  %v2562_v59 = vrot.slane %v3208_v35, 2  ;;  %v3211_v7 = vld [vmem:[%s3437_s26 + $0x198] sm:$0xff] }
 0x21d   : > { %v2468_v50 = vadd.f32 %v2388_v43, %v2161_v45  ;;  %v3209_v45 = vld [vmem:[%s3437_s26 + $0x188] sm:$0xff] }
 0x21e   : > { %3159 = vmatmul.msk.f32.gmra.mxu1 %vm352_vm1, %v1664_v33  ;;  %v2682_v55 = vpop.f32.mrf.mxu0  ;;  %v2563_v24 = vrot.slane %v3209_v45, 2 }
 0x21f   : > { %v2759_v14 = vadd.f32 %v2679_v18, %v2468_v50  ;;  %3240 = vmatmul.msk.f32.gmra.mxu2 %vm352_vm1, %v3203_v44  ;;  %v2272_v50 = vrot.slane %v3209_v45, 1 }
 0x220   : > { %3273 = vmatmul.msk.f32.gmra.mxu3 %vm352_vm1, %v2265_v54  ;;  %v2271_v54 = vrot.slane %v3208_v35, 1  ;;  %v2564_v32 = vsel %vm707_vm2, %v2562_v59, %v2563_v24 }
 0x221   : > { %2792 = vst.msk [vmem:[%s4584_s14 + $0x40] sm:$0xff] %vm2783_vm3, %v2759_v14  ;;  %3306 = vmatmul.msk.f32.gmra.mxu0 %vm352_vm1, %v2556_v10 }
 0x222   : > { %v2084_v47 = vpop.f32.mrf.mxu2 }
 0x223   : > { %v2391_v44 = vpop.f32.mrf.mxu3  ;;  %v2162_v23 = vadd.f32 %v2084_v47, %v1868_v37  ;;  %v1793_v1 = vpop.f32.mrf.mxu1  ;;  %v3210_v47 = vld [vmem:[%s3437_s26 + $0x190] sm:$0x3] }
 0x224   : > { %v2565_v11 = vrot.slane %v3210_v47, 2 }
 0x225   : > { %v2469_v40 = vadd.f32 %v2391_v44, %v2162_v23  ;;  %v4969_v44 = vld [vmem:[#allocation22_spill] sm:$0xff] }
 0x226   : > { %3160 = vmatmul.msk.f32.gmra.mxu1 %vm352_vm1, %v4300_v52  ;;  %v2685_v8 = vpop.f32.mrf.mxu0  ;;  %v1869_v52 = vadd.f32 %v1793_v1, %v4287_v30  ;;  %v3357_v1 = vld [vmem:[%s3437_s26 + $0x178] sm:$0x3]  ;;  %v2566_v29 = vsel %vm707_vm2, %v2563_v24, %v2565_v11 }
 0x227   : > { %v2760_v41 = vadd.f32 %v2682_v55, %v2469_v40  ;;  %3241 = vmatmul.msk.f32.gmra.mxu2 %vm352_vm1, %v3205_v2  ;;  %v4968_v2 = vld [vmem:[#allocation17_spill] sm:$0xff]  ;;  %v2274_v40 = vrot.slane %v3210_v47, 1 }
 0x228   : > { %3274 = vmatmul.msk.f32.gmra.mxu3 %vm352_vm1, %v2268_v49  ;;  %v1673_v49 = vrot.slane %v3357_v1, 2 }
 0x229   : > { %2793 = vst.msk [vmem:[%s4584_s14 + $0x48] sm:$0xff] %vm2783_vm3, %v2760_v41  ;;  %3307 = vmatmul.msk.f32.gmra.mxu0 %vm352_vm1, %v2559_v31 }
 0x22a   : > { %v2087_v18 = vpop.f32.mrf.mxu2 }
 0x22b   : > { %v2394_v56 = vpop.f32.mrf.mxu3  ;;  %v2163_v13 = vadd.f32 %v2087_v18, %v1869_v52  ;;  %v1796_v4 = vpop.f32.mrf.mxu1  ;;  %v1674_v52 = vsel %vm707_vm2, %v4329_v39, %v1673_v49  ;;  %v2275_v18 = vsel %vm269_vm0, %v2272_v50, %v2274_v40 }
 0x22c   : > { %v1870_v55 = vadd.f32 %v1796_v4, %v4968_v2 }
 0x22d   : > { %v2470_v43 = vadd.f32 %v2394_v56, %v2163_v13  ;;  %v3212_v13 = vld [vmem:[%s3437_s26 + $0x1a0] sm:$0xff] }
 0x22e   : > { %3161 = vmatmul.msk.f32.gmra.mxu1 %vm352_vm1, %v1669_v15  ;;  %v2688_v30 = vpop.f32.mrf.mxu0 }
 0x22f   : > { %v2761_v33 = vadd.f32 %v2685_v8, %v2470_v43  ;;  %3242 = vmatmul.msk.f32.gmra.mxu2 %vm352_vm1, %v3206_v16  ;;  %v2273_v16 = vsel %vm269_vm0, %v2271_v54, %v2272_v50  ;;  %v2277_v43 = vrot.slane %v3212_v13, 1  ;;  %v2568_v54 = vrot.slane %v3212_v13, 2 }
 0x230   : > { %3275 = vmatmul.msk.f32.gmra.mxu3 %vm352_vm1, %v2270_v38  ;;  %v2276_v38 = vrot.slane %v3211_v7, 1 }
 0x231   : > { %2794 = vst.msk [vmem:[%s4584_s14 + $0x50] sm:$0xff] %vm2783_vm3, %v2761_v33  ;;  %3308 = vmatmul.msk.f32.gmra.mxu0 %vm352_vm1, %v2561_v6  ;;  %v2567_v33 = vrot.slane %v3211_v7, 2 }
 0x232   : > { %v2090_v10 = vpop.f32.mrf.mxu2 }
 0x233   : > { %v2397_v14 = vpop.f32.mrf.mxu3  ;;  %v2164_v37 = vadd.f32 %v2090_v10, %v1870_v55  ;;  %v1799_v22 = vpop.f32.mrf.mxu1  ;;  %v3213_v10 = vld [vmem:[%s3437_s26 + $0x1a8] sm:$0x3]  ;;  %v2569_v59 = vsel %vm707_vm2, %v2567_v33, %v2568_v54 }
 0x234   : > { %v1871_v8 = vadd.f32 %v1799_v22, %v4970_v36 }
 0x235   : > { %v2471_v34 = vadd.f32 %v2397_v14, %v2164_v37  ;;  %v3358_v37 = vld [vmem:[%s3437_s26 + $0x190] sm:$0x3] }
 0x236   : > { %3162 = vmatmul.msk.f32.gmra.mxu1 %vm352_vm1, %v4969_v44  ;;  %v2691_v9 = vpop.f32.mrf.mxu0  ;;  %v1678_v22 = vrot.slane %v3358_v37, 2  ;;  %v2570_v44 = vrot.slane %v3213_v10, 2 }
 0x237   : > { %v2762_v23 = vadd.f32 %v2688_v30, %v2471_v34  ;;  %3243 = vmatmul.msk.f32.gmra.mxu2 %vm352_vm1, %v3208_v35  ;;  %v4971_v35 = vld [vmem:[#allocation3_spill] sm:$0xff] }
 0x238   : > { %3276 = vmatmul.msk.f32.gmra.mxu3 %vm352_vm1, %v2273_v16  ;;  %v2279_v16 = vrot.slane %v3213_v10, 1  ;;  %v2571_v40 = vsel %vm707_vm2, %v2568_v54, %v2570_v44 }
 0x239   : > { %2795 = vst.msk [vmem:[%s4584_s14 + $0x58] sm:$0xff] %vm2783_vm3, %v2762_v23  ;;  %3309 = vmatmul.msk.f32.gmra.mxu0 %vm352_vm1, %v2564_v32  ;;  %v1679_v23 = vsel %vm707_vm2, %v1676_v53, %v1678_v22 }
 0x23a   : > { %v2093_v31 = vpop.f32.mrf.mxu2  ;;  %v2280_v1 = vsel %vm269_vm0, %v2277_v43, %v2279_v16 }
 0x23b   : > { %v2400_v41 = vpop.f32.mrf.mxu3  ;;  %v2165_v27 = vadd.f32 %v2093_v31, %v1871_v8  ;;  %v1802_v21 = vpop.f32.mrf.mxu1 }
 0x23c   : > { %v1872_v39 = vadd.f32 %v1802_v21, %v4971_v35 }
 0x23d   : > { %v2472_v56 = vadd.f32 %v2400_v41, %v2165_v27 }
 0x23e   : > { %3163 = vmatmul.msk.f32.gmra.mxu1 %vm352_vm1, %v1674_v52  ;;  %v2694_v4 = vpop.f32.mrf.mxu0 }
 0x23f   : > { %v2763_v15 = vadd.f32 %v2691_v9, %v2472_v56  ;;  %3244 = vmatmul.msk.f32.gmra.mxu2 %vm352_vm1, %v3209_v45  ;;  %v2278_v45 = vsel %vm269_vm0, %v2276_v38, %v2277_v43 }
 0x240   : > { %3277 = vmatmul.msk.f32.gmra.mxu3 %vm352_vm1, %v2275_v18 }
 0x241   : > { %2796 = vst.msk [vmem:[%s4584_s14 + $0x60] sm:$0xff] %vm2783_vm3, %v2763_v15  ;;  %3310 = vmatmul.msk.f32.gmra.mxu0 %vm352_vm1, %v2566_v29 }
 0x242   : > { %v2096_v30 = vpop.f32.mrf.mxu2 }
 0x243   : > { %v2403_v6 = vpop.f32.mrf.mxu3  ;;  %v2166_v50 = vadd.f32 %v2096_v30, %v1872_v39  ;;  %v1805_v2 = vpop.f32.mrf.mxu1 }
 0x244   : > { %v1873_v34 = vadd.f32 %v1805_v2, %v4357_v28 }
 0x245   : > { %v2473_v55 = vadd.f32 %v2403_v6, %v2166_v50 }
 0x246   : > { %3164 = vmatmul.msk.f32.gmra.mxu1 %vm352_vm1, %v4709_v20  ;;  %v2697_v14 = vpop.f32.mrf.mxu0 }
 0x247   : > { %v2764_v24 = vadd.f32 %v2694_v4, %v2473_v55  ;;  %3245 = vmatmul.msk.f32.gmra.mxu2 %vm352_vm1, %v3211_v7 }
 0x248   : > { %3278 = vmatmul.msk.f32.gmra.mxu3 %vm352_vm1, %v2278_v45 }
 0x249   : > { %2797 = vst.msk [vmem:[%s4584_s14 + $0x68] sm:$0xff] %vm2783_vm3, %v2764_v24  ;;  %3311 = vmatmul.msk.f32.gmra.mxu0 %vm352_vm1, %v2569_v59 }
 0x24a   : > { %v2099_v47 = vpop.f32.mrf.mxu2 }
 0x24b   : > { %v2406_v20 = vpop.f32.mrf.mxu3  ;;  %v2167_v9 = vadd.f32 %v2099_v47, %v1873_v34  ;;  %v1808_v32 = vpop.f32.mrf.mxu1 }
 0x24c   : > { %v1874_v8 = vadd.f32 %v1808_v32, %v4368_v63 }
 0x24d   : > { %v2474_v49 = vadd.f32 %v2406_v20, %v2167_v9 }
 0x24e   : > { %3165 = vmatmul.msk.f32.gmra.mxu1 %vm352_vm1, %v1679_v23  ;;  %v2700_v28 = vpop.f32.mrf.mxu0 }
 0x24f   : > { %v2765_v36 = vadd.f32 %v2697_v14, %v2474_v49  ;;  %3246 = vmatmul.msk.f32.gmra.mxu2 %vm352_vm1, %v3212_v13 }
 0x250   : > { %3279 = vmatmul.msk.f32.gmra.mxu3 %vm352_vm1, %v2280_v1 }
 0x251   : > { %2798 = vst.msk [vmem:[%s4584_s14 + $0x70] sm:$0xff] %vm2783_vm3, %v2765_v36  ;;  %3312 = vmatmul.msk.f32.gmra.mxu0 %vm352_vm1, %v2571_v40 }
 0x252   : > { %v2102_v48 = vpop.f32.mrf.mxu2 }
 0x253   : > { %v2409_v53 = vpop.f32.mrf.mxu3  ;;  %v2168_v31 = vadd.f32 %v2102_v48, %v1874_v8  ;;  %v1811_v41 = vpop.f32.mrf.mxu1 }
 0x254   : > { %v1875_v52 = vadd.f32 %v1811_v41, %v4382_v57 }
 0x255   : > { %v2475_v11 = vadd.f32 %v2409_v53, %v2168_v31 }
 0x256   : > { %v2703_v27 = vpop.f32.mrf.mxu0 }
 0x257   : > { %v2766_v21 = vadd.f32 %v2700_v28, %v2475_v11 }
 0x259   : > { %2799 = vst.msk [vmem:[%s4584_s14 + $0x78] sm:$0xff] %vm2783_vm3, %v2766_v21 }
 0x25a   : > { %v2105_v18 = vpop.f32.mrf.mxu2 }
 0x25b   : > { %v2412_v56 = vpop.f32.mrf.mxu3  ;;  %v2169_v63 = vadd.f32 %v2105_v18, %v1875_v52  ;;  %v1814_v7 = vpop.f32.mrf.mxu1 }
 0x25c   : > { %v1876_v15 = vadd.f32 %v1814_v7, %v4393_v12 }
 0x25d   : > { %v2476_v13 = vadd.f32 %v2412_v56, %v2169_v63 }
 0x25e   : > { %v2706_v4 = vpop.f32.mrf.mxu0 }
 0x25f   : > { %v2767_v29 = vadd.f32 %v2703_v27, %v2476_v13 }
 0x261   : > { %2800 = vst.msk [vmem:[%s4584_s14 + $0x80] sm:$0xff] %vm2783_vm3, %v2767_v29 }
 0x262   : > { %v2108_v38 = vpop.f32.mrf.mxu2 }
 0x263   : > { %v2415_v43 = vpop.f32.mrf.mxu3  ;;  %v2170_v35 = vadd.f32 %v2108_v38, %v1876_v15  ;;  %v1817_v39 = vpop.f32.mrf.mxu1 }
 0x264   : > { %v1877_v33 = vadd.f32 %v1817_v39, %v4407_v5 }
 0x265   : > { %v2477_v57 = vadd.f32 %v2415_v43, %v2170_v35 }
 0x266   : > { %v2709_v30 = vpop.f32.mrf.mxu0 }
 0x267   : > { %v2768_v6 = vadd.f32 %v2706_v4, %v2477_v57 }
 0x269   : > { %2801 = vst.msk [vmem:[%s4584_s14 + $0x88] sm:$0xff] %vm2783_vm3, %v2768_v6 }
 0x26a   : > { %v2111_v54 = vpop.f32.mrf.mxu2 }
 0x26b   : > { %v2418_v50 = vpop.f32.mrf.mxu3  ;;  %v2171_v2 = vadd.f32 %v2111_v54, %v1877_v33  ;;  %v1820_v45 = vpop.f32.mrf.mxu1 }
 0x26c   : > { %v1878_v14 = vadd.f32 %v1820_v45, %v4418_v61 }
 0x26d   : > { %v2478_v12 = vadd.f32 %v2418_v50, %v2171_v2 }
 0x26e   : > { %v2712_v55 = vpop.f32.mrf.mxu0 }
 0x26f   : > { %v2769_v10 = vadd.f32 %v2709_v30, %v2478_v12 }
 0x271   : > { %2802 = vst.msk [vmem:[%s4584_s14 + $0x90] sm:$0xff] %vm2783_vm3, %v2769_v10 }
 0x272   : > { %v2114_v59 = vpop.f32.mrf.mxu2 }
 0x273   : > { %v2421_v24 = vpop.f32.mrf.mxu3  ;;  %v2172_v37 = vadd.f32 %v2114_v59, %v1878_v14  ;;  %v1823_v22 = vpop.f32.mrf.mxu1 }
 0x274   : > { %v1879_v47 = vadd.f32 %v1823_v22, %v4432_v0 }
 0x275   : > { %v2479_v5 = vadd.f32 %v2421_v24, %v2172_v37 }
 0x276   : > { %v2715_v16 = vpop.f32.mrf.mxu0 }
 0x277   : > { %v2770_v34 = vadd.f32 %v2712_v55, %v2479_v5 }
 0x279   : > { %2803 = vst.msk [vmem:[%s4584_s14 + $0x98] sm:$0xff] %vm2783_vm3, %v2770_v34 }
 0x27a   : > { %v2117_v20 = vpop.f32.mrf.mxu2 }
 0x27b   : > { %v2424_v44 = vpop.f32.mrf.mxu3  ;;  %v2173_v9 = vadd.f32 %v2117_v20, %v1879_v47  ;;  %v1826_v32 = vpop.f32.mrf.mxu1 }
 0x27c   : > { %v1880_v49 = vadd.f32 %v1826_v32, %v4443_v62 }
 0x27d   : > { %v2480_v61 = vadd.f32 %v2424_v44, %v2173_v9 }
 0x27e   : > { %v2718_v23 = vpop.f32.mrf.mxu0 }
 0x27f   : > { %v2771_v1 = vadd.f32 %v2715_v16, %v2480_v61 }
 0x281   : > { %2804 = vst.msk [vmem:[%s4584_s14 + $0xa0] sm:$0xff] %vm2783_vm3, %v2771_v1 }
 0x282   : > { %v2120_v28 = vpop.f32.mrf.mxu2 }
 0x283   : > { %v2427_v40 = vpop.f32.mrf.mxu3  ;;  %v2174_v36 = vadd.f32 %v2120_v28, %v1880_v49  ;;  %v1829_v8 = vpop.f32.mrf.mxu1 }
 0x284   : > { %v1881_v31 = vadd.f32 %v1829_v8, %v4457_v46 }
 0x285   : > { %v2481_v0 = vadd.f32 %v2427_v40, %v2174_v36 }
 0x286   : > { %v2721_v48 = vpop.f32.mrf.mxu0 }
 0x287   : > { %v2772_v53 = vadd.f32 %v2718_v23, %v2481_v0 }
 0x289   : > { %2805 = vst.msk [vmem:[%s4584_s14 + $0xa8] sm:$0xff] %vm2783_vm3, %v2772_v53 }
 0x28a   : > { %v2123_v41 = vpop.f32.mrf.mxu2 }
 0x28b   : > { %v2430_v11 = vpop.f32.mrf.mxu3  ;;  %v2175_v27 = vadd.f32 %v2123_v41, %v1881_v31  ;;  %v1832_v21 = vpop.f32.mrf.mxu1 }
 0x28c   : > { %v1882_v56 = vadd.f32 %v1832_v21, %v4468_v60 }
 0x28d   : > { %v2482_v62 = vadd.f32 %v2430_v11, %v2175_v27 }
 0x28e   : > { %v2724_v52 = vpop.f32.mrf.mxu0 }
 0x28f   : > { %v2773_v18 = vadd.f32 %v2721_v48, %v2482_v62 }
 0x291   : > { %2806 = vst.msk [vmem:[%s4584_s14 + $0xb0] sm:$0xff] %vm2783_vm3, %v2773_v18 }
 0x292   : > { %v2126_v63 = vpop.f32.mrf.mxu2 }
 0x293   : > { %v2433_v7 = vpop.f32.mrf.mxu3  ;;  %v2176_v13 = vadd.f32 %v2126_v63, %v1882_v56  ;;  %v1835_v4 = vpop.f32.mrf.mxu1 }
 0x294   : > { %v1883_v38 = vadd.f32 %v1835_v4, %v4482_v42 }
 0x295   : > { %v2483_v46 = vadd.f32 %v2433_v7, %v2176_v13 }
 0x296   : > { %v2727_v29 = vpop.f32.mrf.mxu0 }
 0x297   : > { %v2774_v15 = vadd.f32 %v2724_v52, %v2483_v46 }
 0x299   : > { %2807 = vst.msk [vmem:[%s4584_s14 + $0xb8] sm:$0xff] %vm2783_vm3, %v2774_v15 }
 0x29a   : > { %v2129_v43 = vpop.f32.mrf.mxu2 }
 0x29b   : > { %v2436_v35 = vpop.f32.mrf.mxu3  ;;  %v2177_v39 = vadd.f32 %v2129_v43, %v1883_v38  ;;  %v1838_v57 = vpop.f32.mrf.mxu1 }
 0x29c   : > { %v1884_v33 = vadd.f32 %v1838_v57, %v4493_v3 }
 0x29d   : > { %v2484_v60 = vadd.f32 %v2436_v35, %v2177_v39 }
 0x29e   : > { %v2730_v30 = vpop.f32.mrf.mxu0 }
 0x29f   : > { %v2775_v6 = vadd.f32 %v2727_v29, %v2484_v60 }
 0x2a1   : > { %2808 = vst.msk [vmem:[%s4584_s14 + $0xc0] sm:$0xff] %vm2783_vm3, %v2775_v6 }
 0x2a2   : > { %v2132_v54 = vpop.f32.mrf.mxu2 }
 0x2a3   : > { %v2439_v50 = vpop.f32.mrf.mxu3  ;;  %v2178_v2 = vadd.f32 %v2132_v54, %v1884_v33  ;;  %v1841_v45 = vpop.f32.mrf.mxu1 }
 0x2a4   : > { %v1885_v10 = vadd.f32 %v1841_v45, %v4507_v17 }
 0x2a5   : > { %v2485_v42 = vadd.f32 %v2439_v50, %v2178_v2 }
 0x2a6   : > { %v2733_v12 = vpop.f32.mrf.mxu0 }
 0x2a7   : > { %v2776_v55 = vadd.f32 %v2730_v30, %v2485_v42 }
 0x2a9   : > { %2809 = vst.msk [vmem:[%s4584_s14 + $0xc8] sm:$0xff] %vm2783_vm3, %v2776_v55 }
 0x2aa   : > { %v2135_v14 = vpop.f32.mrf.mxu2 }
 0x2ab   : > { %v2442_v59 = vpop.f32.mrf.mxu3  ;;  %v2179_v24 = vadd.f32 %v2135_v14, %v1885_v10  ;;  %v1844_v37 = vpop.f32.mrf.mxu1 }
 0x2ac   : > { %v1886_v16 = vadd.f32 %v1844_v37, %v4518_v25 }
 0x2ad   : > { %v2486_v3 = vadd.f32 %v2442_v59, %v2179_v24 }
 0x2ae   : > { %v2736_v22 = vpop.f32.mrf.mxu0 }
 0x2af   : > { %v2777_v5 = vadd.f32 %v2733_v12, %v2486_v3 }
 0x2b1   : > { %2810 = vst.msk [vmem:[%s4584_s14 + $0xd0] sm:$0xff] %vm2783_vm3, %v2777_v5 }
 0x2b2   : > { %v2138_v34 = vpop.f32.mrf.mxu2 }
 0x2b3   : > { %v2445_v47 = vpop.f32.mrf.mxu3  ;;  %v2180_v20 = vadd.f32 %v2138_v34, %v1886_v16  ;;  %v1847_v44 = vpop.f32.mrf.mxu1 }
 0x2b4   : > { %v1887_v61 = vadd.f32 %v1847_v44, %v4532_v51 }
 0x2b5   : > { %v2487_v17 = vadd.f32 %v2445_v47, %v2180_v20 }
 0x2b6   : > { %v2739_v9 = vpop.f32.mrf.mxu0 }
 0x2b7   : > { %v2778_v32 = vadd.f32 %v2736_v22, %v2487_v17 }
 0x2b9   : > { %2811 = vst.msk [vmem:[%s4584_s14 + $0xd8] sm:$0xff] %vm2783_vm3, %v2778_v32 }
 0x2ba   : > { %v2141_v23 = vpop.f32.mrf.mxu2 }
 0x2bb   : > { %v2448_v1 = vpop.f32.mrf.mxu3  ;;  %v2181_v49 = vadd.f32 %v2141_v23, %v1887_v61  ;;  %v1850_v28 = vpop.f32.mrf.mxu1 }
 0x2bc   : > { %v1888_v8 = vadd.f32 %v1850_v28, %v4543_v26 }
 0x2bd   : > { %v2488_v25 = vadd.f32 %v2448_v1, %v2181_v49 }
 0x2be   : > { %v2742_v36 = vpop.f32.mrf.mxu0 }
 0x2bf   : > { %v2779_v40 = vadd.f32 %v2739_v9, %v2488_v25 }
 0x2c1   : > { %2812 = vst.msk [vmem:[%s4584_s14 + $0xe0] sm:$0xff] %vm2783_vm3, %v2779_v40 }
 0x2c2   : > { %v2144_v0 = vpop.f32.mrf.mxu2 }
 0x2c3   : > { %v2451_v48 = vpop.f32.mrf.mxu3  ;;  %v2182_v53 = vadd.f32 %v2144_v0, %v1888_v8  ;;  %v1853_v31 = vpop.f32.mrf.mxu1 }
 0x2c4   : > { %v1889_v11 = vadd.f32 %v1853_v31, %v4557_v58 }
 0x2c5   : > { %v2489_v51 = vadd.f32 %v2451_v48, %v2182_v53 }
 0x2c6   : > { %v2745_v27 = vpop.f32.mrf.mxu0 }
 0x2c7   : > { %v2780_v41 = vadd.f32 %v2742_v36, %v2489_v51 }
 0x2c9   : > { %2813 = vst.msk [vmem:[%s4584_s14 + $0xe8] sm:$0xff] %vm2783_vm3, %v2780_v41 }
 0x2ca   : > { %v2147_v21 = vpop.f32.mrf.mxu2 }
 0x2cb   : > { %v2454_v62 = vpop.f32.mrf.mxu3  ;;  %v2183_v52 = vadd.f32 %v2147_v21, %v1889_v11  ;;  %v1856_v26 = vpop.f32.mrf.mxu1 }
 0x2cc   : > { %v1890_v63 = vadd.f32 %v1856_v26, %v4568_v19 }
 0x2cd   : > { %v2490_v18 = vadd.f32 %v2454_v62, %v2183_v52 }
 0x2ce   : > { %v2748_v46 = vpop.f32.mrf.mxu0 }
 0x2cf   : > { %v2781_v56 = vadd.f32 %v2745_v27, %v2490_v18 }
 0x2d1   : > { %2814 = vst.msk [vmem:[%s4584_s14 + $0xf0] sm:$0xff] %vm2783_vm3, %v2781_v56 }
 0x2d2   : > { %v2150_v7 = vpop.f32.mrf.mxu2 }
 0x2d3   : > { %v2457_v13 = vpop.f32.mrf.mxu3  ;;  %v2184_v4 = vadd.f32 %v2150_v7, %v1890_v63 }
 0x2d5   : > { %v2491_v29 = vadd.f32 %v2457_v13, %v2184_v4 }
 0x2d7   : > { %v2782_v58 = vadd.f32 %v2748_v46, %v2491_v29 }
 0x2d9   : > { %2815 = vst.msk [vmem:[%s4584_s14 + $0xf8] sm:$0xff] %vm2783_vm3, %v2782_v58 }
 0x2da PF: > { %s12_s11 = sadd.s32 1, %s3381_s11   ;;  %s4972_s9 = smov %s3377_s10 }
 0x2db   : > { %p9_p5 = scmp.ge.s32.totalorder %s12_s11, 4   ;;  %s4973_s10 = smov %s4975_s12 }
 0x2dd   :  { %11 = sbr.rel (!%p9_p5) target bundleno = 2 (0x2), region = 69 }

</bundles_post_ra>
